<compile_context>
chip_gen: v6e
topology: v6e:2x2x1
jax: 0.10.0
libtpu: 0.0.40
codegen_flags: <defaults>
</compile_context>

<pallas_src>
import functools

import jax
import jax.numpy as jnp
from jax.experimental import pallas as pl
from jax.experimental.pallas import tpu as pltpu


_LANE = 128
_SUBLANE = 8


def _round_up(v, m):
    return ((v + m - 1) // m) * m


# --------------------------------------------------------------------------
# Pallas kernel: fused 3-layer MLP on one row tile.
# --------------------------------------------------------------------------
def _node_mlp_kernel(xin_ref, w1_ref, b1_ref, w2_ref, b2_ref, w3_ref, b3_ref,
                     out_ref):
    """out = relu(relu(xin @ W1 + b1) @ W2 + b2) @ W3 + b3  on one (TM, 3D) tile.

    Matmuls run on bf16 operands with fp32 accumulation; bias adds / ReLUs in
    fp32.  Hidden / output feature dims are already zero-padded to 128 lanes
    by the wrapper, so every vreg and the final store are lane-dense.
    """
    h = jnp.dot(xin_ref[...], w1_ref[...], preferred_element_type=jnp.float32)
    h = jnp.maximum(h + b1_ref[...], 0.0)                                # ReLU

    h = jnp.dot(h.astype(w2_ref.dtype), w2_ref[...],
                preferred_element_type=jnp.float32)
    h = jnp.maximum(h + b2_ref[...], 0.0)                                # ReLU

    h = jnp.dot(h.astype(w3_ref.dtype), w3_ref[...],
                preferred_element_type=jnp.float32)
    out_ref[...] = (h + b3_ref[...]).astype(out_ref.dtype)


# --------------------------------------------------------------------------
# One-time parameter preparation (off the per-call hot path).
# --------------------------------------------------------------------------
def prepare_node_model_params(params, compute_dtype=jnp.bfloat16):
    """Zero-pad feature dims to 128 lanes and cast weights to bf16 once."""
    w1, b1 = params["w1"], params["b1"]          # (3D, H), (1, H)
    w2, b2 = params["w2"], params["b2"]          # (H, H), (1, H)
    w3, b3 = params["w3"], params["b3"]          # (H, E), (1, E)
    k_in, hidden = w1.shape
    embed = w3.shape[1]
    hp = max(_round_up(hidden, _LANE), _LANE)
    ep = max(_round_up(embed, _LANE), _LANE)

    def pad2(a, rows, cols):
        return jnp.pad(a, ((0, rows - a.shape[0]), (0, cols - a.shape[1])))

    # Zero padding keeps the math exact: padded bias columns are 0, ReLU(0)=0,
    # and the corresponding zero weight rows of the next layer contribute 0.
    return {
        "w1": pad2(w1, k_in, hp).astype(compute_dtype),
        "b1": pad2(b1, 1, hp).astype(jnp.float32),
        "w2": pad2(w2, hp, hp).astype(compute_dtype),
        "b2": pad2(b2, 1, hp).astype(jnp.float32),
        "w3": pad2(w3, hp, ep).astype(compute_dtype),
        "b3": pad2(b3, 1, ep).astype(jnp.float32),
        "embed_dim": int(embed),
        "k_in": int(k_in),
        "compute_dtype": compute_dtype,
    }


# --------------------------------------------------------------------------
# Generation-aware planning helpers.
# --------------------------------------------------------------------------
def _vmem_limit_bytes():
    """~75% of physical per-TC VMEM: v5e/v6e 128 MiB -> 96 MiB, v7x 64 -> 48 MiB
    (leaves headroom for compiler-internal scratch so we neither fail to
    compile nor spill)."""
    cap = 64 * 1024 * 1024               # conservative (v7x) default if query fails
    try:
        cap = int(pltpu.get_tpu_info().vmem_capacity_bytes)
    except Exception:
        pass
    return (cap * 3) // 4


def _grid_semantics():
    """'parallel' vs 'arbitrary' barely changes codegen; only core-parallel
    semantics actually split the row grid across v7x's two TensorCores."""
    kind = ""
    try:
        kind = jax.devices()[0].device_kind.lower()
    except Exception:
        pass
    if "v7" in kind:
        return (getattr(pltpu, "CORE_PARALLEL", "parallel"),)
    return ("parallel",)


def _pick_row_tile(n_rows, k_in, hp, ep, in_itemsize, *,
                   max_rows, vmem_limit_bytes, resident_param_bytes):
    # Streamed bytes per row: double-buffered bf16 input + double-buffered
    # fp32 output + live fp32/bf16 hidden activations.
    per_row = 2 * in_itemsize * k_in + 2 * 4 * ep + 12 * hp
    budget = vmem_limit_bytes - resident_param_bytes - (4 << 20)   # scratch headroom
    if budget < per_row * _SUBLANE:
        raise ValueError(
            f"Resident NodeModel weights ({resident_param_bytes} B) leave no room "
            f"for even an 8-row tile within the {vmem_limit_bytes} B VMEM limit.")
    tm = min(n_rows, max_rows, budget // per_row)
    if tm < n_rows:                       # partial tiles must keep 8-row sublanes
        tm = max(_SUBLANE, (tm // _SUBLANE) * _SUBLANE)
    return int(tm)


# --------------------------------------------------------------------------
# Forward wrapper.
# --------------------------------------------------------------------------
def node_model_forward(prepared, x, received_messages, messages_u, *,
                       max_block_rows=4096):
    """Fused NodeModel forward.  `prepared` comes from prepare_node_model_params
    (a raw {'w1': ..., 'b3': ...} dict is also accepted and prepared on the fly)."""
    if "embed_dim" not in prepared:
        prepared = prepare_node_model_params(prepared)

    n = x.shape[0]
    k_in = x.shape[1] + received_messages.shape[1] + messages_u.shape[1]
    assert k_in == prepared["k_in"], (k_in, prepared["k_in"])
    cdt = prepared["compute_dtype"]
    embed = prepared["embed_dim"]

    w1, b1 = prepared["w1"], prepared["b1"]
    w2, b2 = prepared["w2"], prepared["b2"]
    w3, b3 = prepared["w3"], prepared["b3"]
    hp, ep = w2.shape[1], w3.shape[1]

    # torch.cat([x, received_messages, messages_u], dim=1), cast once to bf16
    # so the kernel streams half the HBM bytes and does a single K=3D dot.
    xin = jnp.concatenate(
        [x.astype(cdt), received_messages.astype(cdt), messages_u.astype(cdt)],
        axis=1)

    vmem_limit = _vmem_limit_bytes()
    resident = 2 * sum(int(a.nbytes) for a in (w1, b1, w2, b2, w3, b3))
    tm = _pick_row_tile(n, k_in, hp, ep, jnp.dtype(cdt).itemsize,
                        max_rows=max_block_rows,
                        vmem_limit_bytes=vmem_limit,
                        resident_param_bytes=resident)
    grid = (pl.cdiv(n, tm),)

    def rows(d):
        # Streamed row tile: new block every grid step -> pipelined DMA.
        return pl.BlockSpec((tm, d), lambda i: (i, 0))

    def pinned(a):
        # Constant block index -> weight stays VMEM-resident across the grid.
        # (For very large hidden dims, pipeline_mode=pl.Buffered(1) here would
        # drop the pointless second buffer; negligible at these sizes.)
        return pl.BlockSpec(a.shape, lambda i: (0, 0))

    out_padded = pl.pallas_call(
        _node_mlp_kernel,
        out_shape=jax.ShapeDtypeStruct((n, ep), x.dtype),
        grid=grid,
        in_specs=[rows(k_in),
                  pinned(w1), pinned(b1),
                  pinned(w2), pinned(b2),
                  pinned(w3), pinned(b3)],
        out_specs=rows(ep),                       # 128-lane-dense output store
        compiler_params=pltpu.CompilerParams(
            dimension_semantics=_grid_semantics(),
            vmem_limit_bytes=vmem_limit),
    )(xin, w1, b1, w2, b2, w3, b3)

    return out_padded[:, :embed]


# --------------------------------------------------------------------------
# Parameter init mirroring the PyTorch module
#   weights: nn.init.xavier_normal_, biases: torch Linear default uniform
# --------------------------------------------------------------------------
def init_node_model(key, input_dim, hidden_dim, embed_dim):
    def xavier_linear(k, fan_in, fan_out):
        kw, kb = jax.random.split(k)
        std = (2.0 / (fan_in + fan_out)) ** 0.5            # xavier_normal_
        w = std * jax.random.normal(kw, (fan_in, fan_out), jnp.float32)
        bound = 1.0 / (fan_in ** 0.5)                      # default bias init
        b = jax.random.uniform(kb, (1, fan_out), jnp.float32, -bound, bound)
        return w, b

    k1, k2, k3 = jax.random.split(key, 3)
    w1, b1 = xavier_linear(k1, 3 * input_dim, hidden_dim)
    w2, b2 = xavier_linear(k2, hidden_dim, hidden_dim)
    w3, b3 = xavier_linear(k3, hidden_dim, embed_dim)
    return {"w1": w1, "b1": b1, "w2": w2, "b2": b2, "w3": w3, "b3": b3}


def node_model_reference(params, x, rm, mu):
    """Pure-JAX fp32 (HIGHEST precision) reference for correctness checking."""
    hi = jax.lax.Precision.HIGHEST
    h = jnp.concatenate([x, rm, mu], axis=1)
    h = jnp.maximum(jnp.dot(h, params["w1"], precision=hi) + params["b1"], 0.0)
    h = jnp.maximum(jnp.dot(h, params["w2"], precision=hi) + params["b2"], 0.0)
    return jnp.dot(h, params["w3"], precision=hi) + params["b3"]


# --------------------------------------------------------------------------
if __name__ == "__main__":
    input_dim, hidden_dim, embed_dim = 32, 32, 32
    n_nodes = 2048                      # 4 row tiles of 512 -> exercises pipeline

    key = jax.random.PRNGKey(0)
    k_par, k_x, k_rm, k_mu = jax.random.split(key, 4)

    params = init_node_model(k_par, input_dim, hidden_dim, embed_dim)
    prepared = prepare_node_model_params(params)    # pad/cast once, off hot path

    x = jax.random.normal(k_x, (n_nodes, input_dim), jnp.float32)
    received_messages = jax.random.normal(k_rm, (n_nodes, input_dim), jnp.float32)
    messages_u = jax.random.normal(k_mu, (n_nodes, input_dim), jnp.float32)

    fwd = jax.jit(functools.partial(node_model_forward, prepared,
                                    max_block_rows=512))
    out = jax.block_until_ready(fwd(x, received_messages, messages_u))

    assert out.shape == (n_nodes, embed_dim), out.shape
    assert bool(jnp.all(jnp.isfinite(out)))

    ref = node_model_reference(params, x, received_messages, messages_u)
    # bf16 matmul operands with fp32 accumulation: tolerance sized accordingly.
    max_err = float(jnp.max(jnp.abs(out - ref)))
    assert bool(jnp.allclose(out, ref, atol=5e-2, rtol=5e-2)), max_err

    print("KERNEL_OK")
</pallas_src>

<mosaic_0001>
module attributes {stable_mosaic.version = 11 : i64} {
  func.func @_node_mlp_kernel(%arg0: i32, %arg1: memref<512x96xbf16, #tpu.memory_space<vmem>>, %arg2: memref<96x128xbf16, #tpu.memory_space<vmem>>, %arg3: memref<1x128xf32, #tpu.memory_space<vmem>>, %arg4: memref<128x128xbf16, #tpu.memory_space<vmem>>, %arg5: memref<1x128xf32, #tpu.memory_space<vmem>>, %arg6: memref<128x128xbf16, #tpu.memory_space<vmem>>, %arg7: memref<1x128xf32, #tpu.memory_space<vmem>>, %arg8: memref<512x128xf32, #tpu.memory_space<vmem>>) attributes {dimension_semantics = [#tpu.dimension_semantics<parallel>], iteration_bounds = array<i64: 4>, scalar_prefetch = 0 : i64, scratch_operands = 0 : i64, tpu.core_type = #tpu.core_type<tc>, window_params = [{transform_indices = @transform_0, window_bounds = array<i64: 512, 96>}, {pipeline_mode = #tpu.pipeline_mode<synchronous>, transform_indices = @transform_1, window_bounds = array<i64: 96, 128>}, {pipeline_mode = #tpu.pipeline_mode<synchronous>, transform_indices = @transform_2, window_bounds = array<i64: 1, 128>}, {pipeline_mode = #tpu.pipeline_mode<synchronous>, transform_indices = @transform_3, window_bounds = array<i64: 128, 128>}, {pipeline_mode = #tpu.pipeline_mode<synchronous>, transform_indices = @transform_4, window_bounds = array<i64: 1, 128>}, {pipeline_mode = #tpu.pipeline_mode<synchronous>, transform_indices = @transform_5, window_bounds = array<i64: 128, 128>}, {pipeline_mode = #tpu.pipeline_mode<synchronous>, transform_indices = @transform_6, window_bounds = array<i64: 1, 128>}, {transform_indices = @transform_7, window_bounds = array<i64: 512, 128>}]} {
    %c0 = arith.constant 0 : index
    %c0_0 = arith.constant 0 : index
    %0 = vector.load %arg1[%c0, %c0_0] : memref<512x96xbf16, #tpu.memory_space<vmem>>, vector<512x96xbf16>
    %c0_1 = arith.constant 0 : index
    %c0_2 = arith.constant 0 : index
    %1 = vector.load %arg2[%c0_1, %c0_2] : memref<96x128xbf16, #tpu.memory_space<vmem>>, vector<96x128xbf16>
    %cst = arith.constant dense<0.000000e+00> : vector<512x128xf32>
    %2 = tpu.matmul %0, %1, %cst {dimension_numbers = #tpu.dot_dimension_numbers<[1], [0], [0], [1], [0, 0, 1, 1], [], []>} : vector<512x96xbf16>, vector<96x128xbf16>, vector<512x128xf32> -> vector<512x128xf32>
    %c0_3 = arith.constant 0 : index
    %c0_4 = arith.constant 0 : index
    %3 = vector.load %arg3[%c0_3, %c0_4] : memref<1x128xf32, #tpu.memory_space<vmem>>, vector<1x128xf32>
    %4 = vector.broadcast %3 : vector<1x128xf32> to vector<512x128xf32>
    %5 = arith.addf %2, %4 : vector<512x128xf32>
    %cst_5 = arith.constant 0.000000e+00 : f32
    %6 = vector.broadcast %cst_5 : f32 to vector<512x128xf32>
    %7 = arith.maximumf %5, %6 : vector<512x128xf32>
    %8 = arith.truncf %7 : vector<512x128xf32> to vector<512x128xbf16>
    %c0_6 = arith.constant 0 : index
    %c0_7 = arith.constant 0 : index
    %9 = vector.load %arg4[%c0_6, %c0_7] : memref<128x128xbf16, #tpu.memory_space<vmem>>, vector<128x128xbf16>
    %cst_8 = arith.constant dense<0.000000e+00> : vector<512x128xf32>
    %10 = tpu.matmul %8, %9, %cst_8 {dimension_numbers = #tpu.dot_dimension_numbers<[1], [0], [0], [1], [0, 0, 1, 1], [], []>} : vector<512x128xbf16>, vector<128x128xbf16>, vector<512x128xf32> -> vector<512x128xf32>
    %c0_9 = arith.constant 0 : index
    %c0_10 = arith.constant 0 : index
    %11 = vector.load %arg5[%c0_9, %c0_10] : memref<1x128xf32, #tpu.memory_space<vmem>>, vector<1x128xf32>
    %12 = vector.broadcast %11 : vector<1x128xf32> to vector<512x128xf32>
    %13 = arith.addf %10, %12 : vector<512x128xf32>
    %cst_11 = arith.constant 0.000000e+00 : f32
    %14 = vector.broadcast %cst_11 : f32 to vector<512x128xf32>
    %15 = arith.maximumf %13, %14 : vector<512x128xf32>
    %16 = arith.truncf %15 : vector<512x128xf32> to vector<512x128xbf16>
    %c0_12 = arith.constant 0 : index
    %c0_13 = arith.constant 0 : index
    %17 = vector.load %arg6[%c0_12, %c0_13] : memref<128x128xbf16, #tpu.memory_space<vmem>>, vector<128x128xbf16>
    %cst_14 = arith.constant dense<0.000000e+00> : vector<512x128xf32>
    %18 = tpu.matmul %16, %17, %cst_14 {dimension_numbers = #tpu.dot_dimension_numbers<[1], [0], [0], [1], [0, 0, 1, 1], [], []>} : vector<512x128xbf16>, vector<128x128xbf16>, vector<512x128xf32> -> vector<512x128xf32>
    %c0_15 = arith.constant 0 : index
    %c0_16 = arith.constant 0 : index
    %19 = vector.load %arg7[%c0_15, %c0_16] : memref<1x128xf32, #tpu.memory_space<vmem>>, vector<1x128xf32>
    %20 = vector.broadcast %19 : vector<1x128xf32> to vector<512x128xf32>
    %21 = arith.addf %18, %20 : vector<512x128xf32>
    %c0_17 = arith.constant 0 : index
    %c0_18 = arith.constant 0 : index
    %22 = vector.load %arg8[%c0_17, %c0_18] : memref<512x128xf32, #tpu.memory_space<vmem>>, vector<512x128xf32>
    tpu.vector_store %arg8[%c0_17, %c0_18], %21 {strides = array<i32>} : memref<512x128xf32, #tpu.memory_space<vmem>>, vector<512x128xf32>,
    return
  }
  func.func @transform_0(%arg0: i32) -> (i32, i32) {
    %c0_i32 = arith.constant 0 : i32
    %c0_i32_0 = arith.constant 0 : i32
    return %arg0, %c0_i32 : i32, i32
  }
  func.func @transform_1(%arg0: i32) -> (i32, i32) {
    %c0_i32 = arith.constant 0 : i32
    %c0_i32_0 = arith.constant 0 : i32
    %c0_i32_1 = arith.constant 0 : i32
    return %c0_i32, %c0_i32_0 : i32, i32
  }
  func.func @transform_2(%arg0: i32) -> (i32, i32) {
    %c0_i32 = arith.constant 0 : i32
    %c0_i32_0 = arith.constant 0 : i32
    %c0_i32_1 = arith.constant 0 : i32
    return %c0_i32, %c0_i32_0 : i32, i32
  }
  func.func @transform_3(%arg0: i32) -> (i32, i32) {
    %c0_i32 = arith.constant 0 : i32
    %c0_i32_0 = arith.constant 0 : i32
    %c0_i32_1 = arith.constant 0 : i32
    return %c0_i32, %c0_i32_0 : i32, i32
  }
  func.func @transform_4(%arg0: i32) -> (i32, i32) {
    %c0_i32 = arith.constant 0 : i32
    %c0_i32_0 = arith.constant 0 : i32
    %c0_i32_1 = arith.constant 0 : i32
    return %c0_i32, %c0_i32_0 : i32, i32
  }
  func.func @transform_5(%arg0: i32) -> (i32, i32) {
    %c0_i32 = arith.constant 0 : i32
    %c0_i32_0 = arith.constant 0 : i32
    %c0_i32_1 = arith.constant 0 : i32
    return %c0_i32, %c0_i32_0 : i32, i32
  }
  func.func @transform_6(%arg0: i32) -> (i32, i32) {
    %c0_i32 = arith.constant 0 : i32
    %c0_i32_0 = arith.constant 0 : i32
    %c0_i32_1 = arith.constant 0 : i32
    return %c0_i32, %c0_i32_0 : i32, i32
  }
  func.func @transform_7(%arg0: i32) -> (i32, i32) {
    %c0_i32 = arith.constant 0 : i32
    %c0_i32_0 = arith.constant 0 : i32
    return %arg0, %c0_i32 : i32, i32
  }
}

</mosaic_0001>

<bundles_post_ra>
// kernel: node_model_forward.1
= control target key start
LH: loop header
LB: loop body
LE: loop exit
PB: predicated region body
PF: predicated region fallthrough
CT: control target
= control target key end

     0   :  { %s2556_s24 = smov 0   ;;  %s3042_s0 = inlined_call_operand.vmem [shape: bf16[2048,96], index: 0, kind: input, shape index: {}]   ;;  %s3043_s1 = inlined_call_operand.vmem [shape: bf16[96,128], index: 1, kind: input, shape index: {}]   ;;  %s3044_s2 = inlined_call_operand.vmem [shape: f32[1,128], index: 2, kind: input, shape index: {}]   ;;  %s3045_s3 = inlined_call_operand.vmem [shape: bf16[128,128], index: 3, kind: input, shape index: {}]   ;;  %s3046_s4 = inlined_call_operand.vmem [shape: f32[1,128], index: 4, kind: input, shape index: {}]   ;;  %s3047_s5 = inlined_call_operand.vmem [shape: bf16[128,128], index: 5, kind: input, shape index: {}]   ;;  %s3048_s6 = inlined_call_operand.vmem [shape: f32[1,128], index: 6, kind: input, shape index: {}]   ;;  %s3049_s7 = inlined_call_operand.vmem [shape: f32[2048,128], index: 7, kind: output, shape index: {}]  }
   0x1 LB: > { %s1980_s25 = sadd.s32 4294967295, %s2514_s24   ;;  %p1984_p0 = scmp.ge.s32.totalorder %s2514_s24, 1  ;;  %s2514_s24 = sphi %s2556_s24, %s17_s24  }
   0x2   : > { %p238_p1 = scmp.lt.s32.totalorder %s2514_s24, 5 }
   0x4   : > { %p239_p2 = pnand %p1984_p0, %p238_p1 }
   0x5   : > { %s1985_s28 = sshll.u32 (!%p239_p2), %s1980_s25, 6 }
   0x6   : > { %242 = sbr.rel (%p239_p2) target bundleno = 770 (0x302), region = 48  ;;  %p271_p3 = scmp.lt.s32.totalorder (!%p239_p2), %s1985_s28, 255 }
   0xb   : > { %v2454_v0 = vld [vmem:[%s3043_s1 + $0x28] sm:$0xff]   ;;  %v2455_v1 = vld [vmem:[%s3043_s1 + $0x20] sm:$0xff]   ;;  %s3051_s28 = smov (!%p271_p3, %s1985_s28), 255  ;;  %v2456_v2 = vld [vmem:[%s3043_s1 + $0x18] sm:$0xff]   ;;  %vm562_vm0 = vcmask 785408  }
   0xc   : > { %2198 = vmatprep.subr.bf16.mxu0 %v2454_v0  ;;  %2434 = vmatprep.subr.bf16.mxu1 %v2454_v0  ;;  %s1986_s10 = sshll.u32 %s3051_s28, 2  ;;  %v2457_v4 = vld [vmem:[%s3043_s1 + $0x10] sm:$0xff]   ;;  %v2458_v5 = vld [vmem:[%s3043_s1 + $0x8] sm:$0xff]   ;;  %v2459_v6 = vld [vmem:[%s3043_s1] sm:$0xff]   ;;  %s1988_s15 = sshll.u32 %s3051_s28, 3 }
   0xd   : > { %2199 = vmatpush3.bf16.msra.mxu0 %v2454_v0  ;;  %2440 = vmatpush3.bf16.msra.mxu1 %v2454_v0  ;;  %s2579_s13 = scalar_lea.vmem %s3042_s0, %s1986_s10  ;;  %v2492_v7 = vld [vmem:[%s3045_s3 + $0x38] sm:$0xff]   ;;  %v2493_v21 = vld [vmem:[%s3045_s3 + $0x30] sm:$0xff]   ;;  %v2494_v22 = vld [vmem:[%s3045_s3 + $0x28] sm:$0xff]   ;;  %s2909_s19 = scalar_lea.vmem %s3049_s7, %s1988_s15 }
   0xe   : > { %2200 = vmatprep.subr.bf16.mxu0 %v2455_v1  ;;  %2435 = vmatprep.subr.bf16.mxu1 %v2455_v1  ;;  %v2460_v3 = vld [vmem:[%s2579_s13] sm:$0xff]   ;;  %v2461_v8 = vld [vmem:[%s2579_s13 + $0x8] sm:$0xff]   ;;  %v2462_v9 = vld [vmem:[%s2579_s13 + $0x10] sm:$0xff]  }
   0xf   : > { %2210 = vmatprep.mubr.msk.bf16.mxu0 %vm562_vm0, %v2460_v3  ;;  %v2476_v10 = vld [vmem:[%s2579_s13 + $0x80] sm:$0xff]   ;;  %v2477_v11 = vld [vmem:[%s2579_s13 + $0x88] sm:$0xff]   ;;  %v2478_v12 = vld [vmem:[%s2579_s13 + $0x90] sm:$0xff]  }
  0x10   : > { %2242 = vmatprep.mubr.msk.bf16.mxu1 %vm562_vm0, %v2476_v10  ;;  %v2463_v13 = vld [vmem:[%s2579_s13 + $0x18] sm:$0xff]   ;;  %v2464_v14 = vld [vmem:[%s2579_s13 + $0x20] sm:$0xff]   ;;  %v2465_v17 = vld [vmem:[%s2579_s13 + $0x28] sm:$0xff]  }
  0x11   : > { %2201 = vmatpush3.bf16.msra.mxu0 %v2455_v1  ;;  %2441 = vmatpush3.bf16.msra.mxu1 %v2455_v1  ;;  %v2479_v15 = vld [vmem:[%s2579_s13 + $0x98] sm:$0xff]   ;;  %v2480_v16 = vld [vmem:[%s2579_s13 + $0xa0] sm:$0xff]   ;;  %v2466_v18 = vld [vmem:[%s2579_s13 + $0x30] sm:$0xff]  }
  0x12   : > { %2202 = vmatprep.subr.bf16.mxu0 %v2456_v2  ;;  %2436 = vmatprep.subr.bf16.mxu1 %v2456_v2  ;;  %v2481_v19 = vld [vmem:[%s2579_s13 + $0xa8] sm:$0xff]   ;;  %v2482_v20 = vld [vmem:[%s2579_s13 + $0xb0] sm:$0xff]   ;;  %v2467_v23 = vld [vmem:[%s2579_s13 + $0x38] sm:$0xff]  }
  0x13   : > { %v2483_v24 = vld [vmem:[%s2579_s13 + $0xb8] sm:$0xff]   ;;  %v2495_v25 = vld [vmem:[%s3045_s3 + $0x20] sm:$0xff]   ;;  %v2497_v29 = vld [vmem:[%s3045_s3 + $0x10] sm:$0xff]  }
  0x14   : > { %v2468_v26 = vld [vmem:[%s2579_s13 + $0x40] sm:$0xff]   ;;  %v2496_v28 = vld [vmem:[%s3045_s3 + $0x18] sm:$0xff]   ;;  %v2469_v30 = vld [vmem:[%s2579_s13 + $0x48] sm:$0xff]  }
  0x15   : > { %2203 = vmatpush3.bf16.msra.mxu0 %v2456_v2  ;;  %2442 = vmatpush3.bf16.msra.mxu1 %v2456_v2  ;;  %v2484_v27 = vld [vmem:[%s2579_s13 + $0xc0] sm:$0xff]   ;;  %v2485_v31 = vld [vmem:[%s2579_s13 + $0xc8] sm:$0xff]   ;;  %v2470_v32 = vld [vmem:[%s2579_s13 + $0x50] sm:$0xff]  }
  0x16   : > { %2204 = vmatprep.subr.bf16.mxu0 %v2457_v4  ;;  %2437 = vmatprep.subr.bf16.mxu1 %v2457_v4  ;;  %v2486_v33 = vld [vmem:[%s2579_s13 + $0xd0] sm:$0xff]   ;;  %v2498_v34 = vld [vmem:[%s3045_s3 + $0x8] sm:$0xff]   ;;  %v2471_v35 = vld [vmem:[%s2579_s13 + $0x58] sm:$0xff]  }
  0x17   : > { %v2487_v36 = vld [vmem:[%s2579_s13 + $0xd8] sm:$0xff]   ;;  %v2472_v37 = vld [vmem:[%s2579_s13 + $0x60] sm:$0xff]   ;;  %v2473_v39 = vld [vmem:[%s2579_s13 + $0x68] sm:$0xff]  }
  0x18   : > { %v2488_v38 = vld [vmem:[%s2579_s13 + $0xe0] sm:$0xff]   ;;  %v2489_v40 = vld [vmem:[%s2579_s13 + $0xe8] sm:$0xff]   ;;  %v2474_v41 = vld [vmem:[%s2579_s13 + $0x70] sm:$0xff]  }
  0x19   : > { %2205 = vmatpush3.bf16.msra.mxu0 %v2457_v4  ;;  %2443 = vmatpush3.bf16.msra.mxu1 %v2457_v4  ;;  %v2490_v42 = vld [vmem:[%s2579_s13 + $0xf0] sm:$0xff]   ;;  %v2475_v43 = vld [vmem:[%s2579_s13 + $0x78] sm:$0xff]   ;;  %v2499_v45 = vld [vmem:[%s3045_s3] sm:$0xff]  }
  0x1a   : > { %2206 = vmatprep.subr.bf16.mxu0 %v2458_v5  ;;  %2438 = vmatprep.subr.bf16.mxu1 %v2458_v5  ;;  %v2491_v44 = vld [vmem:[%s2579_s13 + $0xf8] sm:$0xff]   ;;  %v2685_v50 = vld [vmem:[%s3044_s2] ss:$0 sm:$0xff]  ;;  %v2501_v59 = vld [vmem:[%s3047_s5 + $0x30] sm:$0xff]  }
  0x1b   : > { %v2500_v58 = vld [vmem:[%s3047_s5 + $0x38] sm:$0xff]  }
  0x1d   : > { %2207 = vmatpush3.bf16.msra.mxu0 %v2458_v5  ;;  %2444 = vmatpush3.bf16.msra.mxu1 %v2458_v5  ;;  %v2502_v5 = vld [vmem:[%s3047_s5 + $0x28] sm:$0xff]  }
  0x1e   : > { %2208 = vmatprep.subr.bf16.mxu0 %v2459_v6  ;;  %2439 = vmatprep.subr.bf16.mxu1 %v2459_v6 }
  0x21   : > { %2209 = vmatpush3.bf16.msra.mxu0 %v2459_v6  ;;  %2445 = vmatpush3.bf16.msra.mxu1 %v2459_v6 }
  0x22   : > { %2274 = vmatprep.subr.bf16.mxu1 %v2492_v7  ;;  %2354 = vmatprep.subr.bf16.mxu0 %v2500_v58 }
  0x24   : > { %2211 = vmatmul.mubr.msk.bf16.vlgmr.msra.gmra.mxu0 %vm562_vm0, %v2461_v8  ;;  %2243 = vmatmul.mubr.msk.bf16.vlgmr.msra.gmra.mxu1 %vm562_vm0, %v2477_v11 }
  0x25   : > { %2214 = vmatprep.mubr.msk.bf16.mxu0 %vm562_vm0, %v2462_v9  ;;  %2246 = vmatprep.mubr.msk.bf16.mxu1 %vm562_vm0, %v2478_v12 }
  0x26   : > { %2275 = vmatpush3.bf16.msra.mxu1 %v2492_v7  ;;  %2355 = vmatpush3.bf16.msra.mxu0 %v2500_v58 }
  0x27   : > { %2276 = vmatprep.subr.bf16.mxu1 %v2493_v21  ;;  %2356 = vmatprep.subr.bf16.mxu0 %v2501_v59 }
  0x2a   : > { %2277 = vmatpush3.bf16.msra.mxu1 %v2493_v21  ;;  %2357 = vmatpush3.bf16.msra.mxu0 %v2501_v59 }
  0x2b   : > { %2278 = vmatprep.subr.bf16.mxu1 %v2494_v22  ;;  %2358 = vmatprep.subr.bf16.mxu0 %v2502_v5 }
  0x2c   : > { %2215 = vmatmul.mubr.msk.bf16.gmra.mxu0 %vm562_vm0, %v2463_v13  ;;  %2247 = vmatmul.mubr.msk.bf16.gmra.mxu1 %vm562_vm0, %v2479_v15 }
  0x2d   : > { %2218 = vmatprep.mubr.msk.bf16.mxu0 %vm562_vm0, %v2464_v14  ;;  %2250 = vmatprep.mubr.msk.bf16.mxu1 %vm562_vm0, %v2480_v16  ;;  %v2503_v14 = vld [vmem:[%s3047_s5 + $0x20] sm:$0xff]  }
  0x2e   : > { %2279 = vmatpush3.bf16.msra.mxu1 %v2494_v22  ;;  %2359 = vmatpush3.bf16.msra.mxu0 %v2502_v5 }
  0x2f   : > { %2280 = vmatprep.subr.bf16.mxu1 %v2495_v25  ;;  %2360 = vmatprep.subr.bf16.mxu0 %v2503_v14 }
  0x32   : > { %2281 = vmatpush3.bf16.msra.mxu1 %v2495_v25  ;;  %2361 = vmatpush3.bf16.msra.mxu0 %v2503_v14 }
  0x33   : > { %2282 = vmatprep.subr.bf16.mxu1 %v2496_v28 }
  0x34   : > { %2219 = vmatmul.mubr.msk.bf16.gmra.mxu0 %vm562_vm0, %v2465_v17  ;;  %2251 = vmatmul.mubr.msk.bf16.gmra.mxu1 %vm562_vm0, %v2481_v19 }
  0x35   : > { %2222 = vmatprep.mubr.msk.bf16.mxu0 %vm562_vm0, %v2466_v18  ;;  %2254 = vmatprep.mubr.msk.bf16.mxu1 %vm562_vm0, %v2482_v20 }
  0x36   : > { %2283 = vmatpush3.bf16.msra.mxu1 %v2496_v28 }
  0x37   : > { %2284 = vmatprep.subr.bf16.mxu1 %v2497_v29 }
  0x3a   : > { %2285 = vmatpush3.bf16.msra.mxu1 %v2497_v29 }
  0x3b   : > { %2286 = vmatprep.subr.bf16.mxu1 %v2498_v34 }
  0x3c   : > { %2223 = vmatmul.mubr.msk.bf16.gmra.mxu0 %vm562_vm0, %v2467_v23  ;;  %2255 = vmatmul.mubr.msk.bf16.gmra.mxu1 %vm562_vm0, %v2483_v24  ;;  %v2504_v23 = vld [vmem:[%s3047_s5 + $0x18] sm:$0xff]  }
  0x3d   : > { %2226 = vmatprep.mubr.msk.bf16.mxu0 %vm562_vm0, %v2468_v26  ;;  %2258 = vmatprep.mubr.msk.bf16.mxu1 %vm562_vm0, %v2484_v27 }
  0x3e   : > { %2287 = vmatpush3.bf16.msra.mxu1 %v2498_v34  ;;  %2362 = vmatprep.subr.bf16.mxu0 %v2504_v23 }
  0x3f   : > { %2288 = vmatprep.subr.bf16.mxu1 %v2499_v45  ;;  %2363 = vmatpush3.bf16.msra.mxu0 %v2504_v23 }
  0x42   : > { %2289 = vmatpush3.bf16.msra.mxu1 %v2499_v45 }
  0x44   : > { %2227 = vmatmul.mubr.msk.bf16.gmra.mxu0 %vm562_vm0, %v2469_v30  ;;  %2259 = vmatmul.mubr.msk.bf16.gmra.mxu1 %vm562_vm0, %v2485_v31 }
  0x45   : > { %2230 = vmatprep.mubr.msk.bf16.mxu0 %vm562_vm0, %v2470_v32  ;;  %2262 = vmatprep.mubr.msk.bf16.mxu1 %vm562_vm0, %v2486_v33  ;;  %v2505_v32 = vld [vmem:[%s3047_s5 + $0x10] sm:$0xff]  }
  0x46   : > { %2364 = vmatprep.subr.bf16.mxu0 %v2505_v32 }
  0x47   : > { %2365 = vmatpush3.bf16.msra.mxu0 %v2505_v32 }
  0x4c   : > { %2231 = vmatmul.mubr.msk.bf16.gmra.mxu0 %vm562_vm0, %v2471_v35  ;;  %2263 = vmatmul.mubr.msk.bf16.gmra.mxu1 %vm562_vm0, %v2487_v36 }
  0x4d   : > { %2234 = vmatprep.mubr.msk.bf16.mxu0 %vm562_vm0, %v2472_v37  ;;  %2266 = vmatprep.mubr.msk.bf16.mxu1 %vm562_vm0, %v2488_v38 }
  0x54   : > { %2235 = vmatmul.mubr.msk.bf16.gmra.mxu0 %vm562_vm0, %v2473_v39  ;;  %2267 = vmatmul.mubr.msk.bf16.gmra.mxu1 %vm562_vm0, %v2489_v40 }
  0x55   : > { %2238 = vmatprep.mubr.msk.bf16.mxu0 %vm562_vm0, %v2474_v41  ;;  %2270 = vmatprep.mubr.msk.bf16.mxu1 %vm562_vm0, %v2490_v42  ;;  %v2506_v41 = vld [vmem:[%s3047_s5 + $0x8] sm:$0xff]  }
  0x56   : > { %2366 = vmatprep.subr.bf16.mxu0 %v2506_v41 }
  0x57   : > { %2367 = vmatpush3.bf16.msra.mxu0 %v2506_v41 }
  0x5c   : > { %2239 = vmatmul.mubr.msk.bf16.gmra.mxu0 %vm562_vm0, %v2475_v43  ;;  %2271 = vmatmul.mubr.msk.bf16.gmra.mxu1 %vm562_vm0, %v2491_v44 }
  0xe4   : > { %v2212_v46 = vpop.f32.mrf.mxu0  ;;  %v2678_v47 = vpop.f32.mrf.mxu1 }
  0xe5   : > { %v702_v55 = vadd.f32 %v2212_v46, %v2685_v50 }
  0xe6   : > { %v693_v48 = vpop.f32.mrf.mxu0  ;;  %v2680_v49 = vpop.f32.mrf.mxu1 }
  0xe7   : > { %v694_v53 = vadd.f32 %v2685_v50, %v693_v48  ;;  %v950_v2 = vmax.f32 %v702_v55, 0.0 }
  0xe8   : > { %v2213_v51 = vpop.f32.mrf.mxu0  ;;  %v2687_v52 = vpop.f32.mrf.mxu1 }
  0xe9   : > { %v705_v54 = vadd.f32 %v2213_v51, %v2685_v50  ;;  %v948_v0 = vmax.f32 %v694_v53, 0.0 }
  0xea   : > { %v696_v56 = vpop.f32.mrf.mxu0  ;;  %v2692_v57 = vpop.f32.mrf.mxu1 }
  0xeb   : > { %v697_v60 = vadd.f32 %v2685_v50, %v696_v56  ;;  %v951_v61 = vmax.f32 %v705_v54, 0.0 }
  0xec   : > { %v2216_v62 = vpop.f32.mrf.mxu0  ;;  %v2701_v63 = vpop.f32.mrf.mxu1 }
  0xed   : > { %v949_v1 = vmax.f32 %v697_v60, 0.0  ;;  %v1013_v7 = vpack.c.bf16 %v951_v61, %v950_v2  ;;  %v718_v12 = vadd.f32 %v2216_v62, %v2685_v50 }
  0xee   : > { %v709_v3 = vpop.f32.mrf.mxu0  ;;  %v2703_v4 = vpop.f32.mrf.mxu1 }
  0xef   : > { %v1012_v6 = vpack.c.bf16 %v949_v1, %v948_v0  ;;  %v710_v10 = vadd.f32 %v2685_v50, %v709_v3  ;;  %v954_v21 = vmax.f32 %v718_v12, 0.0 }
  0xf0   : > { %v2217_v8 = vpop.f32.mrf.mxu0  ;;  %v2708_v9 = vpop.f32.mrf.mxu1 }
  0xf1   : > { %v721_v11 = vadd.f32 %v2217_v8, %v2685_v50  ;;  %2290 = vmatprep.mubr.bf16.mxu1 %v1012_v6  ;;  %v952_v19 = vmax.f32 %v710_v10, 0.0 }
  0xf2   : > { %v712_v13 = vpop.f32.mrf.mxu0  ;;  %2291 = vmatmul.mubr.bf16.vlgmr.msra.gmra.mxu1 %v1013_v7  ;;  %v2717_v18 = vpop.f32.mrf.mxu1 }
  0xf3   : > { %v713_v15 = vadd.f32 %v2685_v50, %v712_v13  ;;  %v955_v16 = vmax.f32 %v721_v11, 0.0 }
  0xf4   : > { %v2220_v17 = vpop.f32.mrf.mxu0  ;;  %v2722_v27 = vpop.f32.mrf.mxu1 }
  0xf5   : > { %v953_v20 = vmax.f32 %v713_v15, 0.0  ;;  %v1015_v25 = vpack.c.bf16 %v955_v16, %v954_v21  ;;  %v734_v30 = vadd.f32 %v2220_v17, %v2685_v50 }
  0xf6   : > { %v725_v22 = vpop.f32.mrf.mxu0  ;;  %v2731_v36 = vpop.f32.mrf.mxu1 }
  0xf7   : > { %v1014_v24 = vpack.c.bf16 %v953_v20, %v952_v19  ;;  %v726_v28 = vadd.f32 %v2685_v50, %v725_v22  ;;  %v958_v39 = vmax.f32 %v734_v30, 0.0 }
  0xf8   : > { %v2221_v26 = vpop.f32.mrf.mxu0  ;;  %v2736_v45 = vpop.f32.mrf.mxu1 }
  0xf9   : > { %v737_v29 = vadd.f32 %v2221_v26, %v2685_v50  ;;  %2294 = vmatprep.mubr.bf16.mxu1 %v1014_v24  ;;  %v956_v37 = vmax.f32 %v726_v28, 0.0 }
  0xfa   : > { %v728_v31 = vpop.f32.mrf.mxu0  ;;  %2295 = vmatmul.mubr.bf16.gmra.mxu1 %v1015_v25  ;;  %v2742_v58 = vpop.f32.mrf.mxu1 }
  0xfb   : > { %v729_v33 = vadd.f32 %v2685_v50, %v728_v31  ;;  %v959_v34 = vmax.f32 %v737_v29, 0.0 }
  0xfc   : > { %v2224_v35 = vpop.f32.mrf.mxu0  ;;  %v2744_v3 = vpop.f32.mrf.mxu1 }
  0xfd   : > { %v957_v38 = vmax.f32 %v729_v33, 0.0  ;;  %v1017_v43 = vpack.c.bf16 %v959_v34, %v958_v39  ;;  %v750_v51 = vadd.f32 %v2224_v35, %v2685_v50 }
  0xfe   : > { %v741_v40 = vpop.f32.mrf.mxu0  ;;  %v2750_v13 = vpop.f32.mrf.mxu1 }
  0xff   : > { %v1016_v42 = vpack.c.bf16 %v957_v38, %v956_v37  ;;  %v742_v46 = vadd.f32 %v2685_v50, %v741_v40  ;;  %v962_v61 = vmax.f32 %v750_v51, 0.0 }
 0x100   : > { %v2225_v44 = vpop.f32.mrf.mxu0  ;;  %v2752_v22 = vpop.f32.mrf.mxu1 }
 0x101   : > { %v753_v48 = vadd.f32 %v2225_v44, %v2685_v50  ;;  %2298 = vmatprep.mubr.bf16.mxu1 %v1016_v42  ;;  %v960_v59 = vmax.f32 %v742_v46, 0.0 }
 0x102   : > { %v744_v53 = vpop.f32.mrf.mxu0  ;;  %2299 = vmatmul.mubr.bf16.gmra.mxu1 %v1017_v43  ;;  %v2758_v31 = vpop.f32.mrf.mxu1 }
 0x103   : > { %v745_v54 = vadd.f32 %v2685_v50, %v744_v53  ;;  %v963_v55 = vmax.f32 %v753_v48, 0.0 }
 0x104   : > { %v2228_v56 = vpop.f32.mrf.mxu0  ;;  %v2760_v40 = vpop.f32.mrf.mxu1 }
 0x105   : > { %v961_v60 = vmax.f32 %v745_v54, 0.0  ;;  %v1019_v1 = vpack.c.bf16 %v963_v55, %v962_v61  ;;  %v766_v7 = vadd.f32 %v2228_v56, %v2685_v50  ;;  %v822_v61 = vadd.f32 %v2685_v50, %v2680_v49 }
 0x106   : > { %v757_v62 = vpop.f32.mrf.mxu0  ;;  %v2766_v53 = vpop.f32.mrf.mxu1 }
 0x107   : > { %v1018_v0 = vpack.c.bf16 %v961_v60, %v960_v59  ;;  %v758_v5 = vadd.f32 %v2685_v50, %v757_v62  ;;  %v966_v16 = vmax.f32 %v766_v7, 0.0  ;;  %v825_v62 = vadd.f32 %v2685_v50, %v2692_v57 }
 0x108   : > { %v2229_v2 = vpop.f32.mrf.mxu0 }
 0x109   : > { %v769_v6 = vadd.f32 %v2229_v2, %v2685_v50  ;;  %2302 = vmatprep.mubr.bf16.mxu1 %v1018_v0  ;;  %v964_v14 = vmax.f32 %v758_v5, 0.0  ;;  %v2772_v2 = vpop.f32.mrf.mxu1  ;;  %v981_v49 = vmax.f32 %v825_v62, 0.0  ;;  %v881_v62 = vadd.f32 %v2752_v22, %v2685_v50 }
 0x10a   : > { %v760_v8 = vpop.f32.mrf.mxu0  ;;  %2303 = vmatmul.mubr.bf16.gmra.mxu1 %v1019_v1  ;;  %v897_v22 = vadd.f32 %v2772_v2, %v2685_v50 }
 0x10b   : > { %v761_v10 = vadd.f32 %v2685_v50, %v760_v8  ;;  %v967_v11 = vmax.f32 %v769_v6, 0.0 }
 0x10c   : > { %v2232_v12 = vpop.f32.mrf.mxu0 }
 0x10d   : > { %v965_v15 = vmax.f32 %v761_v10, 0.0  ;;  %v1021_v20 = vpack.c.bf16 %v967_v11, %v966_v16  ;;  %v782_v25 = vadd.f32 %v2232_v12, %v2685_v50  ;;  %v980_v10 = vmax.f32 %v822_v61, 0.0 }
 0x10e   : > { %v773_v17 = vpop.f32.mrf.mxu0  ;;  %v878_v61 = vadd.f32 %v2744_v3, %v2685_v50  ;;  %v894_v3 = vadd.f32 %v2760_v40, %v2685_v50 }
 0x10f   : > { %v1020_v19 = vpack.c.bf16 %v965_v15, %v964_v14  ;;  %v774_v23 = vadd.f32 %v2685_v50, %v773_v17  ;;  %v970_v34 = vmax.f32 %v782_v25, 0.0  ;;  %v888_v14 = vpop.f32.mrf.mxu1  ;;  %v833_v25 = vadd.f32 %v2687_v52, %v2685_v50 }
 0x110   : > { %v2233_v21 = vpop.f32.mrf.mxu0  ;;  %v846_v52 = vadd.f32 %v2701_v63, %v2685_v50  ;;  %v862_v63 = vadd.f32 %v2722_v27, %v2685_v50  ;;  %v886_v27 = vadd.f32 %v2685_v50, %v2766_v53 }
 0x111   : > { %v785_v24 = vadd.f32 %v2233_v21, %v2685_v50  ;;  %2306 = vmatprep.mubr.bf16.mxu1 %v1020_v19  ;;  %v968_v32 = vmax.f32 %v774_v23, 0.0  ;;  %v1028_v19 = vpack.c.bf16 %v981_v49, %v980_v10  ;;  %v841_v21 = vadd.f32 %v2685_v50, %v2717_v18 }
 0x112   : > { %v776_v26 = vpop.f32.mrf.mxu0  ;;  %2307 = vmatmul.mubr.bf16.gmra.mxu1 %v1021_v20  ;;  %v838_v20 = vadd.f32 %v2685_v50, %v2703_v4  ;;  %v830_v23 = vadd.f32 %v2678_v47, %v2685_v50  ;;  %v854_v18 = vadd.f32 %v2685_v50, %v2731_v36  ;;  %v857_v47 = vadd.f32 %v2685_v50, %v2742_v58 }
 0x113   : > { %v777_v28 = vadd.f32 %v2685_v50, %v776_v26  ;;  %v971_v29 = vmax.f32 %v785_v24, 0.0  ;;  %v2786_v26 = vpop.f32.mrf.mxu1  ;;  %v870_v36 = vadd.f32 %v2685_v50, %v2750_v13  ;;  %v873_v58 = vadd.f32 %v2685_v50, %v2758_v31 }
 0x114   : > { %v2236_v30 = vpop.f32.mrf.mxu0  ;;  %v990_v13 = vmax.f32 %v862_v63, 0.0  ;;  %v910_v40 = vadd.f32 %v2786_v26, %v2685_v50 }
 0x115   : > { %v969_v33 = vmax.f32 %v777_v28, 0.0  ;;  %v1023_v38 = vpack.c.bf16 %v971_v29, %v970_v34  ;;  %v798_v43 = vadd.f32 %v2236_v30, %v2685_v50  ;;  %v984_v28 = vmax.f32 %v838_v20, 0.0  ;;  %v901_v4 = vpop.f32.mrf.mxu1 }
 0x116   : > { %v789_v35 = vpop.f32.mrf.mxu0  ;;  %v985_v29 = vmax.f32 %v841_v21, 0.0  ;;  %v982_v30 = vmax.f32 %v830_v23, 0.0  ;;  %v902_v53 = vadd.f32 %v2685_v50, %v901_v4 }
 0x117   : > { %v1022_v37 = vpack.c.bf16 %v969_v33, %v968_v32  ;;  %v790_v41 = vadd.f32 %v2685_v50, %v789_v35  ;;  %v974_v56 = vmax.f32 %v798_v43, 0.0  ;;  %v983_v32 = vmax.f32 %v833_v25, 0.0 }
 0x118   : > { %v2237_v39 = vpop.f32.mrf.mxu0  ;;  %v1030_v33 = vpack.c.bf16 %v985_v29, %v984_v28  ;;  %v849_v35 = vadd.f32 %v2708_v9, %v2685_v50  ;;  %v865_v9 = vadd.f32 %v2736_v45, %v2685_v50  ;;  %v889_v45 = vadd.f32 %v2685_v50, %v888_v14 }
 0x119   : > { %v801_v42 = vadd.f32 %v2237_v39, %v2685_v50  ;;  %2310 = vmatprep.mubr.bf16.mxu1 %v1022_v37  ;;  %v972_v54 = vmax.f32 %v790_v41, 0.0  ;;  %v1029_v34 = vpack.c.bf16 %v983_v32, %v982_v30  ;;  %v2265_v37 = vpop.f32.mrf.mxu1  ;;  %v989_v39 = vmax.f32 %v857_v47, 0.0 }
 0x11a   : > { %v792_v44 = vpop.f32.mrf.mxu0  ;;  %2311 = vmatmul.mubr.bf16.gmra.mxu1 %v1023_v38  ;;  %v988_v38 = vmax.f32 %v854_v18, 0.0  ;;  %v986_v41 = vmax.f32 %v846_v52, 0.0  ;;  %v1000_v14 = vmax.f32 %v902_v53, 0.0  ;;  %v1002_v29 = vmax.f32 %v910_v40, 0.0 }
 0x11b   : > { %v793_v46 = vadd.f32 %v2685_v50, %v792_v44  ;;  %v975_v48 = vmax.f32 %v801_v42, 0.0  ;;  %v987_v42 = vmax.f32 %v849_v35, 0.0  ;;  %v904_v43 = vpop.f32.mrf.mxu1 }
 0x11c   : > { %v2240_v51 = vpop.f32.mrf.mxu0  ;;  %v1032_v44 = vpack.c.bf16 %v989_v39, %v988_v38 }
 0x11d   : > { %v973_v55 = vmax.f32 %v793_v46, 0.0  ;;  %v1025_v0 = vpack.c.bf16 %v975_v48, %v974_v56  ;;  %v814_v7 = vadd.f32 %v2240_v51, %v2685_v50  ;;  %v1031_v46 = vpack.c.bf16 %v987_v42, %v986_v41  ;;  %v2268_v48 = vpop.f32.mrf.mxu1  ;;  %v2507_v51 = vld [vmem:[%s3047_s5] sm:$0xff]  }
 0x11e   : > { %v805_v59 = vpop.f32.mrf.mxu0  ;;  %v991_v56 = vmax.f32 %v865_v9, 0.0  ;;  %2368 = vmatprep.subr.bf16.mxu0 %v2507_v51  ;;  %v2834_v9 = vld [vmem:[%s3046_s4] ss:$0 sm:$0xff] }
 0x11f   : > { %v1024_v60 = vpack.c.bf16 %v973_v55, %v972_v54  ;;  %v806_v5 = vadd.f32 %v2685_v50, %v805_v59  ;;  %v978_v16 = vmax.f32 %v814_v7, 0.0  ;;  %v992_v54 = vmax.f32 %v870_v36, 0.0  ;;  %v917_v59 = vpop.f32.mrf.mxu1  ;;  %2369 = vmatpush3.bf16.msra.mxu0 %v2507_v51 }
 0x120   : > { %v2241_v1 = vpop.f32.mrf.mxu0  ;;  %v993_v55 = vmax.f32 %v873_v58, 0.0  ;;  %v995_v7 = vmax.f32 %v881_v62, 0.0  ;;  %v918_v20 = vadd.f32 %v2685_v50, %v917_v59 }
 0x121   : > { %v817_v6 = vadd.f32 %v2241_v1, %v2685_v50  ;;  %2314 = vmatprep.mubr.bf16.mxu1 %v1024_v60  ;;  %v976_v57 = vmax.f32 %v806_v5, 0.0  ;;  %v1033_v60 = vpack.c.bf16 %v991_v56, %v990_v13  ;;  %v996_v1 = vmax.f32 %v886_v27, 0.0 }
 0x122   : > { %v808_v8 = vpop.f32.mrf.mxu0  ;;  %2315 = vmatmul.mubr.bf16.gmra.mxu1 %v1025_v0  ;;  %v1034_v31 = vpack.c.bf16 %v993_v55, %v992_v54  ;;  %v2269_v0 = vpop.f32.mrf.mxu1  ;;  %v997_v5 = vmax.f32 %v889_v45, 0.0  ;;  %v1004_v25 = vmax.f32 %v918_v20, 0.0 }
 0x123   : > { %v809_v11 = vadd.f32 %v2685_v50, %v808_v8  ;;  %v979_v12 = vmax.f32 %v817_v6, 0.0  ;;  %v994_v6 = vmax.f32 %v878_v61, 0.0  ;;  %v929_v26 = vadd.f32 %v2269_v0, %v2685_v50 }
 0x124   : > { %v920_v8 = vpop.f32.mrf.mxu1  ;;  %v1036_v10 = vpack.c.bf16 %v997_v5, %v996_v1 }
 0x125   : > { %v977_v15 = vmax.f32 %v809_v11, 0.0  ;;  %v1027_v24 = vpack.c.bf16 %v979_v12, %v978_v16  ;;  %v905_v11 = vadd.f32 %v2685_v50, %v904_v43  ;;  %v1035_v49 = vpack.c.bf16 %v995_v7, %v994_v6 }
 0x126   : > { %v2272_v12 = vpop.f32.mrf.mxu1  ;;  %v999_v16 = vmax.f32 %v897_v22, 0.0  ;;  %v921_v21 = vadd.f32 %v2685_v50, %v920_v8  ;;  %v1007_v38 = vmax.f32 %v929_v26, 0.0 }
 0x127   : > { %v1026_v17 = vpack.c.bf16 %v977_v15, %v976_v57  ;;  %v1001_v57 = vmax.f32 %v905_v11, 0.0  ;;  %v998_v15 = vmax.f32 %v894_v3, 0.0  ;;  %v942_v42 = vadd.f32 %v2272_v12, %v2685_v50 }
 0x128   : > { %v1005_v28 = vmax.f32 %v921_v21, 0.0 }
 0x129   : > { %2318 = vmatprep.mubr.bf16.mxu1 %v1026_v17  ;;  %v933_v17 = vpop.f32.mrf.mxu1  ;;  %v1037_v23 = vpack.c.bf16 %v999_v16, %v998_v15 }
 0x12a   : > { %2319 = vmatmul.mubr.bf16.gmra.mxu1 %v1027_v24  ;;  %v913_v24 = vadd.f32 %v2265_v37, %v2685_v50  ;;  %v1040_v4 = vpack.c.bf16 %v1005_v28, %v1004_v25 }
 0x12b   : > { %2322 = vmatprep.mubr.bf16.mxu1 %v1028_v19  ;;  %v1038_v19 = vpack.c.bf16 %v1001_v57, %v1000_v14  ;;  %v2273_v2 = vpop.f32.mrf.mxu1 }
 0x12c   : > { %v1003_v30 = vmax.f32 %v913_v24, 0.0  ;;  %v945_v43 = vadd.f32 %v2273_v2, %v2685_v50 }
 0x12d   : > { %v936_v32 = vpop.f32.mrf.mxu1 }
 0x12e   : > { %v937_v18 = vadd.f32 %v2685_v50, %v936_v32  ;;  %v1039_v47 = vpack.c.bf16 %v1003_v30, %v1002_v29  ;;  %v1011_v36 = vmax.f32 %v945_v43, 0.0 }
 0x130   : > { %v1009_v35 = vmax.f32 %v937_v18, 0.0 }
 0x132   : > { %2323 = vmatmul.mubr.bf16.gmra.mxu1 %v1029_v34  ;;  %v926_v34 = vadd.f32 %v2268_v48, %v2685_v50 }
 0x133   : > { %2326 = vmatprep.mubr.bf16.mxu1 %v1030_v33  ;;  %v934_v33 = vadd.f32 %v2685_v50, %v933_v17 }
 0x134   : > { %v1006_v37 = vmax.f32 %v926_v34, 0.0 }
 0x135   : > { %v1008_v52 = vmax.f32 %v934_v33, 0.0 }
 0x136   : > { %v1041_v41 = vpack.c.bf16 %v1007_v38, %v1006_v37 }
 0x137   : > { %v1042_v39 = vpack.c.bf16 %v1009_v35, %v1008_v52 }
 0x13a   : > { %2327 = vmatmul.mubr.bf16.gmra.mxu1 %v1031_v46 }
 0x13b   : > { %2330 = vmatprep.mubr.bf16.mxu1 %v1032_v44  ;;  %v1010_v44 = vmax.f32 %v942_v42, 0.0 }
 0x13d   : > { %v1043_v58 = vpack.c.bf16 %v1011_v36, %v1010_v44 }
 0x142   : > { %2331 = vmatmul.mubr.bf16.gmra.mxu1 %v1033_v60 }
 0x143   : > { %2334 = vmatprep.mubr.bf16.mxu1 %v1034_v31 }
 0x14a   : > { %2335 = vmatmul.mubr.bf16.gmra.mxu1 %v1035_v49 }
 0x14b   : > { %2338 = vmatprep.mubr.bf16.mxu1 %v1036_v10 }
 0x152   : > { %2339 = vmatmul.mubr.bf16.gmra.mxu1 %v1037_v23 }
 0x153   : > { %2342 = vmatprep.mubr.bf16.mxu1 %v1038_v19 }
 0x15a   : > { %2343 = vmatmul.mubr.bf16.gmra.mxu1 %v1039_v47 }
 0x15b   : > { %2346 = vmatprep.mubr.bf16.mxu1 %v1040_v4 }
 0x162   : > { %2347 = vmatmul.mubr.bf16.gmra.mxu1 %v1041_v41 }
 0x163   : > { %2350 = vmatprep.mubr.bf16.mxu1 %v1042_v39 }
 0x16a   : > { %2351 = vmatmul.mubr.bf16.gmra.mxu1 %v1043_v58 }
 0x1b2   : > { %v2292_v46 = vpop.f32.mrf.mxu1 }
 0x1b3   : > { %v1158_v50 = vadd.f32 %v2292_v46, %v2834_v9 }
 0x1b4   : > { %v1149_v63 = vpop.f32.mrf.mxu1 }
 0x1b5   : > { %v1150_v51 = vadd.f32 %v2834_v9, %v1149_v63  ;;  %v1406_v45 = vmax.f32 %v1158_v50, 0.0 }
 0x1b6   : > { %v2293_v48 = vpop.f32.mrf.mxu1 }
 0x1b7   : > { %v1161_v54 = vadd.f32 %v2293_v48, %v2834_v9  ;;  %v1404_v31 = vmax.f32 %v1150_v51, 0.0 }
 0x1b8   : > { %v1152_v55 = vpop.f32.mrf.mxu1 }
 0x1b9   : > { %v1153_v13 = vadd.f32 %v2834_v9, %v1152_v55  ;;  %v1407_v56 = vmax.f32 %v1161_v54, 0.0 }
 0x1ba   : > { %v2296_v59 = vpop.f32.mrf.mxu1 }
 0x1bb   : > { %v1405_v27 = vmax.f32 %v1153_v13, 0.0  ;;  %v1469_v62 = vpack.c.bf16 %v1407_v56, %v1406_v45  ;;  %v1174_v6 = vadd.f32 %v2296_v59, %v2834_v9 }
 0x1bc   : > { %v1165_v60 = vpop.f32.mrf.mxu1 }
 0x1bd   : > { %v1468_v61 = vpack.c.bf16 %v1405_v27, %v1404_v31  ;;  %v1166_v1 = vadd.f32 %v2834_v9, %v1165_v60  ;;  %v1410_v3 = vmax.f32 %v1174_v6, 0.0 }
 0x1be   : > { %v2297_v0 = vpop.f32.mrf.mxu1 }
 0x1bf   : > { %v1177_v5 = vadd.f32 %v2297_v0, %v2834_v9  ;;  %2370 = vmatprep.mubr.bf16.mxu0 %v1468_v61  ;;  %v1408_v11 = vmax.f32 %v1166_v1, 0.0 }
 0x1c0   : > { %v1168_v7 = vpop.f32.mrf.mxu1  ;;  %2371 = vmatmul.mubr.bf16.vlgmr.msra.gmra.mxu0 %v1469_v62 }
 0x1c1   : > { %v1169_v8 = vadd.f32 %v2834_v9, %v1168_v7  ;;  %v1411_v10 = vmax.f32 %v1177_v5, 0.0 }
 0x1c2   : > { %v2300_v53 = vpop.f32.mrf.mxu1 }
 0x1c3   : > { %v1409_v49 = vmax.f32 %v1169_v8, 0.0  ;;  %v1471_v14 = vpack.c.bf16 %v1411_v10, %v1410_v3  ;;  %v1190_v17 = vadd.f32 %v2300_v53, %v2834_v9 }
 0x1c4   : > { %v1181_v22 = vpop.f32.mrf.mxu1 }
 0x1c5   : > { %v1470_v12 = vpack.c.bf16 %v1409_v49, %v1408_v11  ;;  %v1182_v15 = vadd.f32 %v2834_v9, %v1181_v22  ;;  %v1414_v2 = vmax.f32 %v1190_v17, 0.0 }
 0x1c6   : > { %v2301_v57 = vpop.f32.mrf.mxu1 }
 0x1c7   : > { %v1193_v16 = vadd.f32 %v2301_v57, %v2834_v9  ;;  %2374 = vmatprep.mubr.bf16.mxu0 %v1470_v12  ;;  %v1412_v40 = vmax.f32 %v1182_v15, 0.0 }
 0x1c8   : > { %v1184_v19 = vpop.f32.mrf.mxu1  ;;  %2375 = vmatmul.mubr.bf16.gmra.mxu0 %v1471_v14 }
 0x1c9   : > { %v1185_v20 = vadd.f32 %v2834_v9, %v1184_v19  ;;  %v1415_v21 = vmax.f32 %v1193_v16, 0.0 }
 0x1ca   : > { %v2304_v23 = vpop.f32.mrf.mxu1 }
 0x1cb   : > { %v1413_v24 = vmax.f32 %v1185_v20, 0.0  ;;  %v1473_v29 = vpack.c.bf16 %v1415_v21, %v1414_v2  ;;  %v1206_v33 = vadd.f32 %v2304_v23, %v2834_v9 }
 0x1cc   : > { %v1197_v25 = vpop.f32.mrf.mxu1 }
 0x1cd   : > { %v1472_v28 = vpack.c.bf16 %v1413_v24, %v1412_v40  ;;  %v1198_v32 = vadd.f32 %v2834_v9, %v1197_v25  ;;  %v1418_v37 = vmax.f32 %v1206_v33, 0.0 }
 0x1ce   : > { %v2305_v30 = vpop.f32.mrf.mxu1 }
 0x1cf   : > { %v1209_v4 = vadd.f32 %v2305_v30, %v2834_v9  ;;  %2378 = vmatprep.mubr.bf16.mxu0 %v1472_v28  ;;  %v1416_v52 = vmax.f32 %v1198_v32, 0.0 }
 0x1d0   : > { %v1200_v18 = vpop.f32.mrf.mxu1  ;;  %2379 = vmatmul.mubr.bf16.gmra.mxu0 %v1473_v29 }
 0x1d1   : > { %v1201_v47 = vadd.f32 %v2834_v9, %v1200_v18  ;;  %v1419_v34 = vmax.f32 %v1209_v4, 0.0 }
 0x1d2   : > { %v2308_v26 = vpop.f32.mrf.mxu1 }
 0x1d3   : > { %v1417_v35 = vmax.f32 %v1201_v47, 0.0  ;;  %v1475_v41 = vpack.c.bf16 %v1419_v34, %v1418_v37  ;;  %v1222_v36 = vadd.f32 %v2308_v26, %v2834_v9 }
 0x1d4   : > { %v1213_v38 = vpop.f32.mrf.mxu1 }
 0x1d5   : > { %v1474_v39 = vpack.c.bf16 %v1417_v35, %v1416_v52  ;;  %v1214_v43 = vadd.f32 %v2834_v9, %v1213_v38  ;;  %v1422_v50 = vmax.f32 %v1222_v36, 0.0 }
 0x1d6   : > { %v2309_v42 = vpop.f32.mrf.mxu1 }
 0x1d7   : > { %v1225_v44 = vadd.f32 %v2309_v42, %v2834_v9  ;;  %2382 = vmatprep.mubr.bf16.mxu0 %v1474_v39  ;;  %v1420_v51 = vmax.f32 %v1214_v43, 0.0 }
 0x1d8   : > { %v1216_v58 = vpop.f32.mrf.mxu1  ;;  %2383 = vmatmul.mubr.bf16.gmra.mxu0 %v1475_v41 }
 0x1d9   : > { %v1217_v46 = vadd.f32 %v2834_v9, %v1216_v58  ;;  %v1423_v63 = vmax.f32 %v1225_v44, 0.0 }
 0x1da   : > { %v2312_v48 = vpop.f32.mrf.mxu1 }
 0x1db   : > { %v1421_v54 = vmax.f32 %v1217_v46, 0.0  ;;  %v1477_v56 = vpack.c.bf16 %v1423_v63, %v1422_v50  ;;  %v1238_v45 = vadd.f32 %v2312_v48, %v2834_v9 }
 0x1dc   : > { %v1229_v55 = vpop.f32.mrf.mxu1 }
 0x1dd   : > { %v1476_v13 = vpack.c.bf16 %v1421_v54, %v1420_v51  ;;  %v1230_v31 = vadd.f32 %v2834_v9, %v1229_v55  ;;  %v1426_v6 = vmax.f32 %v1238_v45, 0.0 }
 0x1de   : > { %v2313_v59 = vpop.f32.mrf.mxu1 }
 0x1df   : > { %v1241_v27 = vadd.f32 %v2313_v59, %v2834_v9  ;;  %2386 = vmatprep.mubr.bf16.mxu0 %v1476_v13  ;;  %v1424_v1 = vmax.f32 %v1230_v31, 0.0 }
 0x1e0   : > { %v1232_v60 = vpop.f32.mrf.mxu1  ;;  %2387 = vmatmul.mubr.bf16.gmra.mxu0 %v1477_v56 }
 0x1e1   : > { %v1233_v61 = vadd.f32 %v2834_v9, %v1232_v60  ;;  %v1427_v62 = vmax.f32 %v1241_v27, 0.0 }
 0x1e2   : > { %v2316_v0 = vpop.f32.mrf.mxu1 }
 0x1e3   : > { %v1425_v5 = vmax.f32 %v1233_v61, 0.0  ;;  %v1479_v10 = vpack.c.bf16 %v1427_v62, %v1426_v6  ;;  %v1254_v3 = vadd.f32 %v2316_v0, %v2834_v9 }
 0x1e4   : > { %v1245_v7 = vpop.f32.mrf.mxu1 }
 0x1e5   : > { %v1478_v8 = vpack.c.bf16 %v1425_v5, %v1424_v1  ;;  %v1246_v11 = vadd.f32 %v2834_v9, %v1245_v7  ;;  %v1430_v17 = vmax.f32 %v1254_v3, 0.0 }
 0x1e6   : > { %v2317_v53 = vpop.f32.mrf.mxu1 }
 0x1e7   : > { %v1257_v49 = vadd.f32 %v2317_v53, %v2834_v9  ;;  %2390 = vmatprep.mubr.bf16.mxu0 %v1478_v8  ;;  %v1428_v15 = vmax.f32 %v1246_v11, 0.0 }
 0x1e8   : > { %v1248_v22 = vpop.f32.mrf.mxu1  ;;  %2391 = vmatmul.mubr.bf16.gmra.mxu0 %v1479_v10 }
 0x1e9   : > { %v1249_v12 = vadd.f32 %v2834_v9, %v1248_v22  ;;  %v1431_v14 = vmax.f32 %v1257_v49, 0.0 }
 0x1ea   : > { %v2320_v57 = vpop.f32.mrf.mxu1 }
 0x1eb   : > { %v1429_v16 = vmax.f32 %v1249_v12, 0.0  ;;  %v1481_v21 = vpack.c.bf16 %v1431_v14, %v1430_v17  ;;  %v1270_v2 = vadd.f32 %v2320_v57, %v2834_v9 }
 0x1ec   : > { %v1261_v19 = vpop.f32.mrf.mxu1 }
 0x1ed   : > { %v1480_v20 = vpack.c.bf16 %v1429_v16, %v1428_v15  ;;  %v1262_v40 = vadd.f32 %v2834_v9, %v1261_v19  ;;  %v1434_v33 = vmax.f32 %v1270_v2, 0.0 }
 0x1ee   : > { %v2321_v23 = vpop.f32.mrf.mxu1 }
 0x1ef   : > { %v1273_v24 = vadd.f32 %v2321_v23, %v2834_v9  ;;  %2394 = vmatprep.mubr.bf16.mxu0 %v1480_v20  ;;  %v1432_v32 = vmax.f32 %v1262_v40, 0.0 }
 0x1f0   : > { %v1264_v25 = vpop.f32.mrf.mxu1  ;;  %2395 = vmatmul.mubr.bf16.gmra.mxu0 %v1481_v21 }
 0x1f1   : > { %v1265_v28 = vadd.f32 %v2834_v9, %v1264_v25  ;;  %v1435_v29 = vmax.f32 %v1273_v24, 0.0 }
 0x1f2   : > { %v2324_v30 = vpop.f32.mrf.mxu1 }
 0x1f3   : > { %v1433_v4 = vmax.f32 %v1265_v28, 0.0  ;;  %v1483_v34 = vpack.c.bf16 %v1435_v29, %v1434_v33  ;;  %v1286_v37 = vadd.f32 %v2324_v30, %v2834_v9 }
 0x1f4   : > { %v1277_v18 = vpop.f32.mrf.mxu1 }
 0x1f5   : > { %v1482_v47 = vpack.c.bf16 %v1433_v4, %v1432_v32  ;;  %v1278_v52 = vadd.f32 %v2834_v9, %v1277_v18  ;;  %v1438_v36 = vmax.f32 %v1286_v37, 0.0 }
 0x1f6   : > { %v2325_v26 = vpop.f32.mrf.mxu1 }
 0x1f7   : > { %v1289_v35 = vadd.f32 %v2325_v26, %v2834_v9  ;;  %2398 = vmatprep.mubr.bf16.mxu0 %v1482_v47  ;;  %v1436_v43 = vmax.f32 %v1278_v52, 0.0 }
 0x1f8   : > { %v1280_v38 = vpop.f32.mrf.mxu1  ;;  %2399 = vmatmul.mubr.bf16.gmra.mxu0 %v1483_v34 }
 0x1f9   : > { %v1281_v39 = vadd.f32 %v2834_v9, %v1280_v38  ;;  %v1439_v41 = vmax.f32 %v1289_v35, 0.0 }
 0x1fa   : > { %v2328_v42 = vpop.f32.mrf.mxu1 }
 0x1fb   : > { %v1437_v44 = vmax.f32 %v1281_v39, 0.0  ;;  %v1485_v63 = vpack.c.bf16 %v1439_v41, %v1438_v36  ;;  %v1302_v50 = vadd.f32 %v2328_v42, %v2834_v9 }
 0x1fc   : > { %v1293_v58 = vpop.f32.mrf.mxu1 }
 0x1fd   : > { %v1484_v46 = vpack.c.bf16 %v1437_v44, %v1436_v43  ;;  %v1294_v51 = vadd.f32 %v2834_v9, %v1293_v58  ;;  %v1442_v45 = vmax.f32 %v1302_v50, 0.0 }
 0x1fe   : > { %v2329_v48 = vpop.f32.mrf.mxu1 }
 0x1ff   : > { %v1305_v54 = vadd.f32 %v2329_v48, %v2834_v9  ;;  %2402 = vmatprep.mubr.bf16.mxu0 %v1484_v46  ;;  %v1440_v31 = vmax.f32 %v1294_v51, 0.0 }
 0x200   : > { %v1296_v55 = vpop.f32.mrf.mxu1  ;;  %2403 = vmatmul.mubr.bf16.gmra.mxu0 %v1485_v63 }
 0x201   : > { %v1297_v13 = vadd.f32 %v2834_v9, %v1296_v55  ;;  %v1443_v56 = vmax.f32 %v1305_v54, 0.0 }
 0x202   : > { %v2332_v59 = vpop.f32.mrf.mxu1 }
 0x203   : > { %v1441_v27 = vmax.f32 %v1297_v13, 0.0  ;;  %v1487_v62 = vpack.c.bf16 %v1443_v56, %v1442_v45  ;;  %v1318_v6 = vadd.f32 %v2332_v59, %v2834_v9 }
 0x204   : > { %v1309_v60 = vpop.f32.mrf.mxu1 }
 0x205   : > { %v1486_v61 = vpack.c.bf16 %v1441_v27, %v1440_v31  ;;  %v1310_v1 = vadd.f32 %v2834_v9, %v1309_v60  ;;  %v1446_v3 = vmax.f32 %v1318_v6, 0.0 }
 0x206   : > { %v2333_v0 = vpop.f32.mrf.mxu1 }
 0x207   : > { %v1321_v5 = vadd.f32 %v2333_v0, %v2834_v9  ;;  %2406 = vmatprep.mubr.bf16.mxu0 %v1486_v61  ;;  %v1444_v11 = vmax.f32 %v1310_v1, 0.0 }
 0x208   : > { %v1312_v7 = vpop.f32.mrf.mxu1  ;;  %2407 = vmatmul.mubr.bf16.gmra.mxu0 %v1487_v62 }
 0x209   : > { %v1313_v8 = vadd.f32 %v2834_v9, %v1312_v7  ;;  %v1447_v10 = vmax.f32 %v1321_v5, 0.0 }
 0x20a   : > { %v2336_v53 = vpop.f32.mrf.mxu1 }
 0x20b   : > { %v1445_v49 = vmax.f32 %v1313_v8, 0.0  ;;  %v1489_v14 = vpack.c.bf16 %v1447_v10, %v1446_v3  ;;  %v1334_v17 = vadd.f32 %v2336_v53, %v2834_v9 }
 0x20c   : > { %v1325_v22 = vpop.f32.mrf.mxu1 }
 0x20d   : > { %v1488_v12 = vpack.c.bf16 %v1445_v49, %v1444_v11  ;;  %v1326_v15 = vadd.f32 %v2834_v9, %v1325_v22  ;;  %v1450_v2 = vmax.f32 %v1334_v17, 0.0 }
 0x20e   : > { %v2337_v57 = vpop.f32.mrf.mxu1 }
 0x20f   : > { %v1337_v16 = vadd.f32 %v2337_v57, %v2834_v9  ;;  %2410 = vmatprep.mubr.bf16.mxu0 %v1488_v12  ;;  %v1448_v40 = vmax.f32 %v1326_v15, 0.0 }
 0x210   : > { %v1328_v19 = vpop.f32.mrf.mxu1  ;;  %2411 = vmatmul.mubr.bf16.gmra.mxu0 %v1489_v14 }
 0x211   : > { %v1329_v20 = vadd.f32 %v2834_v9, %v1328_v19  ;;  %v1451_v21 = vmax.f32 %v1337_v16, 0.0 }
 0x212   : > { %v2340_v23 = vpop.f32.mrf.mxu1 }
 0x213   : > { %v1449_v24 = vmax.f32 %v1329_v20, 0.0  ;;  %v1491_v29 = vpack.c.bf16 %v1451_v21, %v1450_v2  ;;  %v1350_v33 = vadd.f32 %v2340_v23, %v2834_v9  ;;  %v2904_v20 = vld [vmem:[%s3048_s6] ss:$0 sm:$0xff] }
 0x214   : > { %v1341_v25 = vpop.f32.mrf.mxu1 }
 0x215   : > { %v1490_v28 = vpack.c.bf16 %v1449_v24, %v1448_v40  ;;  %v1342_v32 = vadd.f32 %v2834_v9, %v1341_v25  ;;  %v1454_v37 = vmax.f32 %v1350_v33, 0.0 }
 0x216   : > { %v2341_v30 = vpop.f32.mrf.mxu1 }
 0x217   : > { %v1353_v4 = vadd.f32 %v2341_v30, %v2834_v9  ;;  %2414 = vmatprep.mubr.bf16.mxu0 %v1490_v28  ;;  %v1452_v52 = vmax.f32 %v1342_v32, 0.0 }
 0x218   : > { %v1344_v18 = vpop.f32.mrf.mxu1  ;;  %2415 = vmatmul.mubr.bf16.gmra.mxu0 %v1491_v29 }
 0x219   : > { %v1345_v47 = vadd.f32 %v2834_v9, %v1344_v18  ;;  %v1455_v34 = vmax.f32 %v1353_v4, 0.0 }
 0x21a   : > { %v2344_v26 = vpop.f32.mrf.mxu1 }
 0x21b   : > { %v1453_v35 = vmax.f32 %v1345_v47, 0.0  ;;  %v1493_v41 = vpack.c.bf16 %v1455_v34, %v1454_v37  ;;  %v1366_v36 = vadd.f32 %v2344_v26, %v2834_v9 }
 0x21c   : > { %v1357_v38 = vpop.f32.mrf.mxu1 }
 0x21d   : > { %v1492_v39 = vpack.c.bf16 %v1453_v35, %v1452_v52  ;;  %v1358_v43 = vadd.f32 %v2834_v9, %v1357_v38  ;;  %v1458_v50 = vmax.f32 %v1366_v36, 0.0 }
 0x21e   : > { %v2345_v42 = vpop.f32.mrf.mxu1 }
 0x21f   : > { %v1369_v44 = vadd.f32 %v2345_v42, %v2834_v9  ;;  %2418 = vmatprep.mubr.bf16.mxu0 %v1492_v39  ;;  %v1456_v51 = vmax.f32 %v1358_v43, 0.0 }
 0x220   : > { %v1360_v58 = vpop.f32.mrf.mxu1  ;;  %2419 = vmatmul.mubr.bf16.gmra.mxu0 %v1493_v41 }
 0x221   : > { %v1361_v46 = vadd.f32 %v2834_v9, %v1360_v58  ;;  %v1459_v63 = vmax.f32 %v1369_v44, 0.0 }
 0x222   : > { %v2348_v48 = vpop.f32.mrf.mxu1 }
 0x223   : > { %v1457_v54 = vmax.f32 %v1361_v46, 0.0  ;;  %v1495_v56 = vpack.c.bf16 %v1459_v63, %v1458_v50  ;;  %v1382_v45 = vadd.f32 %v2348_v48, %v2834_v9 }
 0x224   : > { %v1373_v55 = vpop.f32.mrf.mxu1 }
 0x225   : > { %v1494_v13 = vpack.c.bf16 %v1457_v54, %v1456_v51  ;;  %v1374_v31 = vadd.f32 %v2834_v9, %v1373_v55  ;;  %v1462_v6 = vmax.f32 %v1382_v45, 0.0 }
 0x226   : > { %v2349_v59 = vpop.f32.mrf.mxu1 }
 0x227   : > { %v1385_v27 = vadd.f32 %v2349_v59, %v2834_v9  ;;  %2422 = vmatprep.mubr.bf16.mxu0 %v1494_v13  ;;  %v1460_v1 = vmax.f32 %v1374_v31, 0.0 }
 0x228   : > { %v1376_v60 = vpop.f32.mrf.mxu1  ;;  %2423 = vmatmul.mubr.bf16.gmra.mxu0 %v1495_v56 }
 0x229   : > { %v1377_v61 = vadd.f32 %v2834_v9, %v1376_v60  ;;  %v1463_v62 = vmax.f32 %v1385_v27, 0.0 }
 0x22a   : > { %v2352_v0 = vpop.f32.mrf.mxu1 }
 0x22b   : > { %v1461_v5 = vmax.f32 %v1377_v61, 0.0  ;;  %v1497_v10 = vpack.c.bf16 %v1463_v62, %v1462_v6  ;;  %v1398_v3 = vadd.f32 %v2352_v0, %v2834_v9 }
 0x22c   : > { %v1389_v7 = vpop.f32.mrf.mxu1 }
 0x22d   : > { %v1496_v8 = vpack.c.bf16 %v1461_v5, %v1460_v1  ;;  %v1390_v11 = vadd.f32 %v2834_v9, %v1389_v7  ;;  %v1466_v16 = vmax.f32 %v1398_v3, 0.0 }
 0x22e   : > { %v2353_v53 = vpop.f32.mrf.mxu1 }
 0x22f   : > { %v1401_v49 = vadd.f32 %v2353_v53, %v2834_v9  ;;  %2426 = vmatprep.mubr.bf16.mxu0 %v1496_v8  ;;  %v1464_v57 = vmax.f32 %v1390_v11, 0.0 }
 0x230   : > { %v1392_v22 = vpop.f32.mrf.mxu1  ;;  %2427 = vmatmul.mubr.bf16.gmra.mxu0 %v1497_v10 }
 0x231   : > { %v1393_v12 = vadd.f32 %v2834_v9, %v1392_v22  ;;  %v1467_v14 = vmax.f32 %v1401_v49, 0.0 }
 0x233   : > { %v1465_v15 = vmax.f32 %v1393_v12, 0.0  ;;  %v1499_v19 = vpack.c.bf16 %v1467_v14, %v1466_v16 }
 0x235   : > { %v1498_v17 = vpack.c.bf16 %v1465_v15, %v1464_v57 }
 0x237   : > { %2430 = vmatprep.mubr.bf16.mxu0 %v1498_v17 }
 0x238   : > { %2431 = vmatmul.mubr.bf16.gmra.mxu0 %v1499_v19 }
 0x280   : > { %v2372_v9 = vpop.f32.mrf.mxu0 }
 0x281   : > { %v1614_v21 = vadd.f32 %v2372_v9, %v2904_v20 }
 0x282   : > { %v1605_v23 = vpop.f32.mrf.mxu0 }
 0x283   : > { %1862 = vst [vmem:[%s2909_s19 + $0x10] sm:$0xff] %v1614_v21  ;;  %v1606_v40 = vadd.f32 %v2904_v20, %v1605_v23 }
 0x284   : > { %v2373_v24 = vpop.f32.mrf.mxu0 }
 0x285   : > { %1860 = vst [vmem:[%s2909_s19] sm:$0xff] %v1606_v40  ;;  %v1617_v2 = vadd.f32 %v2373_v24, %v2904_v20 }
 0x286   : > { %v1608_v25 = vpop.f32.mrf.mxu0 }
 0x287   : > { %1863 = vst [vmem:[%s2909_s19 + $0x18] sm:$0xff] %v1617_v2  ;;  %v1609_v28 = vadd.f32 %v2904_v20, %v1608_v25 }
 0x288   : > { %v2376_v29 = vpop.f32.mrf.mxu0 }
 0x289   : > { %1861 = vst [vmem:[%s2909_s19 + $0x8] sm:$0xff] %v1609_v28  ;;  %v1630_v30 = vadd.f32 %v2376_v29, %v2904_v20 }
 0x28a   : > { %v1621_v32 = vpop.f32.mrf.mxu0 }
 0x28b   : > { %1866 = vst [vmem:[%s2909_s19 + $0x30] sm:$0xff] %v1630_v30  ;;  %v1622_v4 = vadd.f32 %v2904_v20, %v1621_v32 }
 0x28c   : > { %v2377_v33 = vpop.f32.mrf.mxu0 }
 0x28d   : > { %1864 = vst [vmem:[%s2909_s19 + $0x20] sm:$0xff] %v1622_v4  ;;  %v1633_v18 = vadd.f32 %v2377_v33, %v2904_v20 }
 0x28e   : > { %v1624_v47 = vpop.f32.mrf.mxu0 }
 0x28f   : > { %1867 = vst [vmem:[%s2909_s19 + $0x38] sm:$0xff] %v1633_v18  ;;  %v1625_v34 = vadd.f32 %v2904_v20, %v1624_v47 }
 0x290   : > { %v2380_v26 = vpop.f32.mrf.mxu0 }
 0x291   : > { %1865 = vst [vmem:[%s2909_s19 + $0x28] sm:$0xff] %v1625_v34  ;;  %v1646_v52 = vadd.f32 %v2380_v26, %v2904_v20 }
 0x292   : > { %v1637_v35 = vpop.f32.mrf.mxu0 }
 0x293   : > { %1870 = vst [vmem:[%s2909_s19 + $0x50] sm:$0xff] %v1646_v52  ;;  %v1638_v37 = vadd.f32 %v2904_v20, %v1637_v35 }
 0x294   : > { %v2381_v38 = vpop.f32.mrf.mxu0 }
 0x295   : > { %1868 = vst [vmem:[%s2909_s19 + $0x40] sm:$0xff] %v1638_v37  ;;  %v1649_v39 = vadd.f32 %v2381_v38, %v2904_v20 }
 0x296   : > { %v1640_v41 = vpop.f32.mrf.mxu0 }
 0x297   : > { %1871 = vst [vmem:[%s2909_s19 + $0x58] sm:$0xff] %v1649_v39  ;;  %v1641_v42 = vadd.f32 %v2904_v20, %v1640_v41 }
 0x298   : > { %v2384_v43 = vpop.f32.mrf.mxu0 }
 0x299   : > { %1869 = vst [vmem:[%s2909_s19 + $0x48] sm:$0xff] %v1641_v42  ;;  %v1662_v44 = vadd.f32 %v2384_v43, %v2904_v20 }
 0x29a   : > { %v1653_v36 = vpop.f32.mrf.mxu0 }
 0x29b   : > { %1874 = vst [vmem:[%s2909_s19 + $0x70] sm:$0xff] %v1662_v44  ;;  %v1654_v58 = vadd.f32 %v2904_v20, %v1653_v36 }
 0x29c   : > { %v2385_v46 = vpop.f32.mrf.mxu0 }
 0x29d   : > { %1872 = vst [vmem:[%s2909_s19 + $0x60] sm:$0xff] %v1654_v58  ;;  %v1665_v63 = vadd.f32 %v2385_v46, %v2904_v20 }
 0x29e   : > { %v1656_v48 = vpop.f32.mrf.mxu0 }
 0x29f   : > { %1875 = vst [vmem:[%s2909_s19 + $0x78] sm:$0xff] %v1665_v63  ;;  %v1657_v51 = vadd.f32 %v2904_v20, %v1656_v48 }
 0x2a0   : > { %v2388_v54 = vpop.f32.mrf.mxu0 }
 0x2a1   : > { %1873 = vst [vmem:[%s2909_s19 + $0x68] sm:$0xff] %v1657_v51  ;;  %v1678_v50 = vadd.f32 %v2388_v54, %v2904_v20 }
 0x2a2   : > { %v1669_v55 = vpop.f32.mrf.mxu0 }
 0x2a3   : > { %1878 = vst [vmem:[%s2909_s19 + $0x90] sm:$0xff] %v1678_v50  ;;  %v1670_v13 = vadd.f32 %v2904_v20, %v1669_v55 }
 0x2a4   : > { %v2389_v56 = vpop.f32.mrf.mxu0 }
 0x2a5   : > { %1876 = vst [vmem:[%s2909_s19 + $0x80] sm:$0xff] %v1670_v13  ;;  %v1681_v59 = vadd.f32 %v2389_v56, %v2904_v20 }
 0x2a6   : > { %v1672_v31 = vpop.f32.mrf.mxu0 }
 0x2a7   : > { %1879 = vst [vmem:[%s2909_s19 + $0x98] sm:$0xff] %v1681_v59  ;;  %v1673_v27 = vadd.f32 %v2904_v20, %v1672_v31 }
 0x2a8   : > { %v2392_v45 = vpop.f32.mrf.mxu0 }
 0x2a9   : > { %1877 = vst [vmem:[%s2909_s19 + $0x88] sm:$0xff] %v1673_v27  ;;  %v1694_v60 = vadd.f32 %v2392_v45, %v2904_v20 }
 0x2aa   : > { %v1685_v61 = vpop.f32.mrf.mxu0 }
 0x2ab   : > { %1882 = vst [vmem:[%s2909_s19 + $0xb0] sm:$0xff] %v1694_v60  ;;  %v1686_v62 = vadd.f32 %v2904_v20, %v1685_v61 }
 0x2ac   : > { %v2393_v0 = vpop.f32.mrf.mxu0 }
 0x2ad   : > { %1880 = vst [vmem:[%s2909_s19 + $0xa0] sm:$0xff] %v1686_v62  ;;  %v1697_v1 = vadd.f32 %v2393_v0, %v2904_v20 }
 0x2ae   : > { %v1688_v5 = vpop.f32.mrf.mxu0 }
 0x2af   : > { %1883 = vst [vmem:[%s2909_s19 + $0xb8] sm:$0xff] %v1697_v1  ;;  %v1689_v6 = vadd.f32 %v2904_v20, %v1688_v5 }
 0x2b0   : > { %v2396_v7 = vpop.f32.mrf.mxu0 }
 0x2b1   : > { %1881 = vst [vmem:[%s2909_s19 + $0xa8] sm:$0xff] %v1689_v6  ;;  %v1710_v8 = vadd.f32 %v2396_v7, %v2904_v20 }
 0x2b2   : > { %v1701_v10 = vpop.f32.mrf.mxu0 }
 0x2b3   : > { %1886 = vst [vmem:[%s2909_s19 + $0xd0] sm:$0xff] %v1710_v8  ;;  %v1702_v53 = vadd.f32 %v2904_v20, %v1701_v10 }
 0x2b4   : > { %v2397_v11 = vpop.f32.mrf.mxu0 }
 0x2b5   : > { %1884 = vst [vmem:[%s2909_s19 + $0xc0] sm:$0xff] %v1702_v53  ;;  %v1713_v49 = vadd.f32 %v2397_v11, %v2904_v20 }
 0x2b6   : > { %v1704_v3 = vpop.f32.mrf.mxu0 }
 0x2b7   : > { %1887 = vst [vmem:[%s2909_s19 + $0xd8] sm:$0xff] %v1713_v49  ;;  %v1705_v22 = vadd.f32 %v2904_v20, %v1704_v3 }
 0x2b8   : > { %v2400_v12 = vpop.f32.mrf.mxu0 }
 0x2b9   : > { %1885 = vst [vmem:[%s2909_s19 + $0xc8] sm:$0xff] %v1705_v22  ;;  %v1726_v14 = vadd.f32 %v2400_v12, %v2904_v20 }
 0x2ba   : > { %v1717_v57 = vpop.f32.mrf.mxu0 }
 0x2bb   : > { %1890 = vst [vmem:[%s2909_s19 + $0xf0] sm:$0xff] %v1726_v14  ;;  %v1718_v15 = vadd.f32 %v2904_v20, %v1717_v57 }
 0x2bc   : > { %v2401_v16 = vpop.f32.mrf.mxu0 }
 0x2bd   : > { %1888 = vst [vmem:[%s2909_s19 + $0xe0] sm:$0xff] %v1718_v15  ;;  %v1729_v17 = vadd.f32 %v2401_v16, %v2904_v20 }
 0x2be   : > { %v1720_v19 = vpop.f32.mrf.mxu0 }
 0x2bf   : > { %1891 = vst [vmem:[%s2909_s19 + $0xf8] sm:$0xff] %v1729_v17  ;;  %v1721_v9 = vadd.f32 %v2904_v20, %v1720_v19 }
 0x2c0   : > { %v2404_v21 = vpop.f32.mrf.mxu0 }
 0x2c1   : > { %1889 = vst [vmem:[%s2909_s19 + $0xe8] sm:$0xff] %v1721_v9  ;;  %v1742_v23 = vadd.f32 %v2404_v21, %v2904_v20 }
 0x2c2   : > { %v1733_v40 = vpop.f32.mrf.mxu0 }
 0x2c3   : > { %1894 = vst [vmem:[%s2909_s19 + $0x110] sm:$0xff] %v1742_v23  ;;  %v1734_v24 = vadd.f32 %v2904_v20, %v1733_v40 }
 0x2c4   : > { %v2405_v2 = vpop.f32.mrf.mxu0 }
 0x2c5   : > { %1892 = vst [vmem:[%s2909_s19 + $0x100] sm:$0xff] %v1734_v24  ;;  %v1745_v25 = vadd.f32 %v2405_v2, %v2904_v20 }
 0x2c6   : > { %v1736_v28 = vpop.f32.mrf.mxu0 }
 0x2c7   : > { %1895 = vst [vmem:[%s2909_s19 + $0x118] sm:$0xff] %v1745_v25  ;;  %v1737_v29 = vadd.f32 %v2904_v20, %v1736_v28 }
 0x2c8   : > { %v2408_v30 = vpop.f32.mrf.mxu0 }
 0x2c9   : > { %1893 = vst [vmem:[%s2909_s19 + $0x108] sm:$0xff] %v1737_v29  ;;  %v1758_v32 = vadd.f32 %v2408_v30, %v2904_v20 }
 0x2ca   : > { %v1749_v4 = vpop.f32.mrf.mxu0 }
 0x2cb   : > { %1898 = vst [vmem:[%s2909_s19 + $0x130] sm:$0xff] %v1758_v32  ;;  %v1750_v33 = vadd.f32 %v2904_v20, %v1749_v4 }
 0x2cc   : > { %v2409_v18 = vpop.f32.mrf.mxu0 }
 0x2cd   : > { %1896 = vst [vmem:[%s2909_s19 + $0x120] sm:$0xff] %v1750_v33  ;;  %v1761_v47 = vadd.f32 %v2409_v18, %v2904_v20 }
 0x2ce   : > { %v1752_v34 = vpop.f32.mrf.mxu0 }
 0x2cf   : > { %1899 = vst [vmem:[%s2909_s19 + $0x138] sm:$0xff] %v1761_v47  ;;  %v1753_v26 = vadd.f32 %v2904_v20, %v1752_v34 }
 0x2d0   : > { %v2412_v52 = vpop.f32.mrf.mxu0 }
 0x2d1   : > { %1897 = vst [vmem:[%s2909_s19 + $0x128] sm:$0xff] %v1753_v26  ;;  %v1774_v35 = vadd.f32 %v2412_v52, %v2904_v20 }
 0x2d2   : > { %v1765_v37 = vpop.f32.mrf.mxu0 }
 0x2d3   : > { %1902 = vst [vmem:[%s2909_s19 + $0x150] sm:$0xff] %v1774_v35  ;;  %v1766_v38 = vadd.f32 %v2904_v20, %v1765_v37 }
 0x2d4   : > { %v2413_v39 = vpop.f32.mrf.mxu0 }
 0x2d5   : > { %1900 = vst [vmem:[%s2909_s19 + $0x140] sm:$0xff] %v1766_v38  ;;  %v1777_v41 = vadd.f32 %v2413_v39, %v2904_v20 }
 0x2d6   : > { %v1768_v42 = vpop.f32.mrf.mxu0 }
 0x2d7   : > { %1903 = vst [vmem:[%s2909_s19 + $0x158] sm:$0xff] %v1777_v41  ;;  %v1769_v43 = vadd.f32 %v2904_v20, %v1768_v42 }
 0x2d8   : > { %v2416_v44 = vpop.f32.mrf.mxu0 }
 0x2d9   : > { %1901 = vst [vmem:[%s2909_s19 + $0x148] sm:$0xff] %v1769_v43  ;;  %v1790_v36 = vadd.f32 %v2416_v44, %v2904_v20 }
 0x2da   : > { %v1781_v58 = vpop.f32.mrf.mxu0 }
 0x2db   : > { %1906 = vst [vmem:[%s2909_s19 + $0x170] sm:$0xff] %v1790_v36  ;;  %v1782_v46 = vadd.f32 %v2904_v20, %v1781_v58 }
 0x2dc   : > { %v2417_v63 = vpop.f32.mrf.mxu0 }
 0x2dd   : > { %1904 = vst [vmem:[%s2909_s19 + $0x160] sm:$0xff] %v1782_v46  ;;  %v1793_v48 = vadd.f32 %v2417_v63, %v2904_v20 }
 0x2de   : > { %v1784_v51 = vpop.f32.mrf.mxu0 }
 0x2df   : > { %1907 = vst [vmem:[%s2909_s19 + $0x178] sm:$0xff] %v1793_v48  ;;  %v1785_v54 = vadd.f32 %v2904_v20, %v1784_v51 }
 0x2e0   : > { %v2420_v50 = vpop.f32.mrf.mxu0 }
 0x2e1   : > { %1905 = vst [vmem:[%s2909_s19 + $0x168] sm:$0xff] %v1785_v54  ;;  %v1806_v55 = vadd.f32 %v2420_v50, %v2904_v20 }
 0x2e2   : > { %v1797_v13 = vpop.f32.mrf.mxu0 }
 0x2e3   : > { %1910 = vst [vmem:[%s2909_s19 + $0x190] sm:$0xff] %v1806_v55  ;;  %v1798_v56 = vadd.f32 %v2904_v20, %v1797_v13 }
 0x2e4   : > { %v2421_v59 = vpop.f32.mrf.mxu0 }
 0x2e5   : > { %1908 = vst [vmem:[%s2909_s19 + $0x180] sm:$0xff] %v1798_v56  ;;  %v1809_v31 = vadd.f32 %v2421_v59, %v2904_v20 }
 0x2e6   : > { %v1800_v27 = vpop.f32.mrf.mxu0 }
 0x2e7   : > { %1911 = vst [vmem:[%s2909_s19 + $0x198] sm:$0xff] %v1809_v31  ;;  %v1801_v45 = vadd.f32 %v2904_v20, %v1800_v27 }
 0x2e8   : > { %v2424_v60 = vpop.f32.mrf.mxu0 }
 0x2e9   : > { %1909 = vst [vmem:[%s2909_s19 + $0x188] sm:$0xff] %v1801_v45  ;;  %v1822_v61 = vadd.f32 %v2424_v60, %v2904_v20 }
 0x2ea   : > { %v1813_v62 = vpop.f32.mrf.mxu0 }
 0x2eb   : > { %1914 = vst [vmem:[%s2909_s19 + $0x1b0] sm:$0xff] %v1822_v61  ;;  %v1814_v0 = vadd.f32 %v2904_v20, %v1813_v62 }
 0x2ec   : > { %v2425_v1 = vpop.f32.mrf.mxu0 }
 0x2ed   : > { %1912 = vst [vmem:[%s2909_s19 + $0x1a0] sm:$0xff] %v1814_v0  ;;  %v1825_v5 = vadd.f32 %v2425_v1, %v2904_v20 }
 0x2ee   : > { %v1816_v6 = vpop.f32.mrf.mxu0 }
 0x2ef   : > { %1915 = vst [vmem:[%s2909_s19 + $0x1b8] sm:$0xff] %v1825_v5  ;;  %v1817_v7 = vadd.f32 %v2904_v20, %v1816_v6 }
 0x2f0   : > { %v2428_v8 = vpop.f32.mrf.mxu0 }
 0x2f1   : > { %1913 = vst [vmem:[%s2909_s19 + $0x1a8] sm:$0xff] %v1817_v7  ;;  %v1838_v10 = vadd.f32 %v2428_v8, %v2904_v20 }
 0x2f2   : > { %v1829_v53 = vpop.f32.mrf.mxu0 }
 0x2f3   : > { %1918 = vst [vmem:[%s2909_s19 + $0x1d0] sm:$0xff] %v1838_v10  ;;  %v1830_v11 = vadd.f32 %v2904_v20, %v1829_v53 }
 0x2f4   : > { %v2429_v49 = vpop.f32.mrf.mxu0 }
 0x2f5   : > { %1916 = vst [vmem:[%s2909_s19 + $0x1c0] sm:$0xff] %v1830_v11  ;;  %v1841_v3 = vadd.f32 %v2429_v49, %v2904_v20 }
 0x2f6   : > { %v1832_v22 = vpop.f32.mrf.mxu0 }
 0x2f7   : > { %1919 = vst [vmem:[%s2909_s19 + $0x1d8] sm:$0xff] %v1841_v3  ;;  %v1833_v12 = vadd.f32 %v2904_v20, %v1832_v22 }
 0x2f8   : > { %v2432_v14 = vpop.f32.mrf.mxu0 }
 0x2f9   : > { %1917 = vst [vmem:[%s2909_s19 + $0x1c8] sm:$0xff] %v1833_v12  ;;  %v1854_v57 = vadd.f32 %v2432_v14, %v2904_v20 }
 0x2fa   : > { %v1845_v15 = vpop.f32.mrf.mxu0 }
 0x2fb   : > { %1922 = vst [vmem:[%s2909_s19 + $0x1f0] sm:$0xff] %v1854_v57  ;;  %v1846_v16 = vadd.f32 %v2904_v20, %v1845_v15 }
 0x2fc   : > { %v2433_v17 = vpop.f32.mrf.mxu0 }
 0x2fd   : > { %1920 = vst [vmem:[%s2909_s19 + $0x1e0] sm:$0xff] %v1846_v16  ;;  %v1857_v19 = vadd.f32 %v2433_v17, %v2904_v20 }
 0x2fe   : > { %v1848_v9 = vpop.f32.mrf.mxu0 }
 0x2ff   : > { %1923 = vst [vmem:[%s2909_s19 + $0x1f8] sm:$0xff] %v1857_v19  ;;  %v1849_v21 = vadd.f32 %v2904_v20, %v1848_v9 }
 0x301   : > { %1921 = vst [vmem:[%s2909_s19 + $0x1e8] sm:$0xff] %v1849_v21 }
 0x302 PF: > { %s17_s24 = sadd.s32 1, %s2514_s24  }
 0x303   : > { %p14_p4 = scmp.ge.s32.totalorder %s17_s24, 6  }
 0x305   :  { %16 = sbr.rel (!%p14_p4) target bundleno = 1 (0x1), region = 78 }

</bundles_post_ra>
